<compile_context>
chip_gen: v7x
topology: tpu7x:2x2x1
jax: 0.10.0
libtpu: 0.0.40
codegen_flags: <defaults>
</compile_context>

<pallas_src>
import math

import jax
import jax.numpy as jnp
from jax import lax
from jax.experimental import pallas as pl
from jax.experimental.pallas import tpu as pltpu

_LANE = 128
_SUBLANE = 8


def _round_up(x, m):
    return ((x + m - 1) // m) * m


def model_ias_kernel(emb_ref, mask_ref, wih_ref, whh_ref, b_ref,
                     wslot_ref, bslot_ref, wint_ref, bint_ref,
                     slots_ref, intent_ref,
                     gx_ref, hall_ref):
    # Per grid step (one batch tile of Bt rows):
    #   emb [T, Bt, E] bf16, mask [T, Bt, 1] f32,
    #   w_ih [E, 4Hp] bf16, w_hh [Hp, 4Hp] bf16, b [1, 4Hp] f32,
    #   w_slot [Hp, Sp] bf16, b_slot [1, Sp] f32, w_int [Hp, Ip] bf16,
    #   b_int [1, Ip] f32 -> slots [T, Bt, Sp] f32, intent [Bt, Ip] f32.
    # Scratch: gx [T*Bt, 4Hp] bf16, hall [T*Bt, Hp] bf16.
    T, Bt, _ = emb_ref.shape
    Hp = whh_ref.shape[0]
    G = 4 * Hp
    Sp = wslot_ref.shape[1]

    # ---- Phase 1: input projection for ALL timesteps in one MXU matmul ----
    # (bias is NOT added here; it is folded into the in-loop gate add)
    emb2d = emb_ref[...].reshape(T * Bt, emb_ref.shape[2])
    gx_ref[...] = jnp.dot(emb2d, wih_ref[...],
                          preferred_element_type=jnp.float32).astype(jnp.bfloat16)

    # ---- Phase 2: serial recurrence; only h @ w_hh + gate math on crit path ----
    # TODO(synk): stage w_hh in the MXU across steps (pltpu.matmul_push_rhs /
    # matmul_acc_lhs / matmul_pop) to avoid re-streaming the RHS every step.
    w_hh = whh_ref[...]                                   # bf16 [Hp, 4Hp]
    bias = b_ref[...]                                     # f32  [1, 4Hp]

    def step(t, h, c, row):
        gx_t = gx_ref[pl.ds(row, Bt), :]                  # bf16, promoted on add
        gates = jnp.dot(h.astype(jnp.bfloat16), w_hh,
                        preferred_element_type=jnp.float32) + gx_t + bias
        # packed gate column order: (input, forget, output | cell); all slices
        # are 128-lane aligned, the three sigmoids run as one contiguous slab.
        sig = jax.nn.sigmoid(gates[:, :3 * Hp])
        i_g = sig[:, 0 * Hp:1 * Hp]
        f_g = sig[:, 1 * Hp:2 * Hp]
        o_g = sig[:, 2 * Hp:3 * Hp]
        g_g = jnp.tanh(gates[:, 3 * Hp:])
        c_new = f_g * c + i_g * g_g
        h_new = o_g * jnp.tanh(c_new)

        m = mask_ref[t] != 0.0                            # [Bt, 1] bool
        # Freeze (h, c) at t = len - 1 (packed-LSTM last_hidden semantics);
        # single select on the serial chain instead of a 3-op blend.
        h = jnp.where(m, h_new, h)
        c = jnp.where(m, c_new, c)
        h_bf = h.astype(jnp.bfloat16)                     # the one bf16 cast / step
        # pad_packed_sequence zero-pads outputs beyond each length.
        hall_ref[pl.ds(row, Bt), :] = jnp.where(m, h_bf, jnp.zeros_like(h_bf))
        return h, c

    h = jnp.zeros((Bt, Hp), jnp.float32)
    c = jnp.zeros((Bt, Hp), jnp.float32)
    if T <= 16 and Bt <= 32:
        # Small working set: full static unroll lets the LLO scheduler overlap
        # MXU / EUP / VPU work of adjacent steps.
        for t in range(T):
            h, c = step(t, h, c, t * Bt)
    else:
        # Realistic shapes: bounded unroll keeps vreg pressure fixed (the full
        # Python unroll does not bound live ranges and goes spill-bound).
        def body(t, carry):
            hh, cc = carry
            return step(t, hh, cc, pl.multiple_of(t * Bt, Bt))
        h, c = lax.fori_loop(0, T, body, (h, c), unroll=2)

    # ---- Phase 3: batched output projections (lane-dense stores) ----
    slots2d = jnp.dot(hall_ref[...], wslot_ref[...],
                      preferred_element_type=jnp.float32) + bslot_ref[...]
    slots_ref[...] = slots2d.reshape(T, Bt, Sp)
    intent_ref[...] = (jnp.dot(h.astype(jnp.bfloat16), wint_ref[...],
                               preferred_element_type=jnp.float32) + bint_ref[...])


def model_ias_forward(params, utterance, seq_lengths):
    """utterance: [B, T] int32 token ids; seq_lengths: [B] int32."""
    B, T = utterance.shape
    E = params["emb"].shape[1]
    H = params["w_hh"].shape[0]
    S = params["w_slot"].shape[1]
    I = params["w_int"].shape[1]

    Hp = _round_up(H, _LANE)       # lane-aligned hidden (gate blocks 128-wide)
    Sp = _round_up(S, _LANE)
    Ip = _round_up(I, _LANE)
    Bp = _round_up(B, _SUBLANE)    # sublane-aligned batch
    G = 4 * Hp
    # Batch tile: multiple of 8 that divides Bp; up to 64 rows per grid step.
    Bt = math.gcd(Bp, 64)
    n_tiles = Bp // Bt

    # --- pack / zero-pad / bf16-cast weights; gate order (i, f, o | g) ---
    def pack_gates(w):             # [R, 4H] (i,f,g,o) -> [R, 4*Hp] (i,f,o,g)
        r = w.shape[0]
        w4 = w.reshape(r, 4, H)[:, [0, 1, 3, 2], :]
        w4 = jnp.pad(w4, ((0, 0), (0, 0), (0, Hp - H)))
        return w4.reshape(r, G)

    w_ih = pack_gates(params["w_ih"]).astype(jnp.bfloat16)                      # [E, G]
    w_hh = pack_gates(
        jnp.pad(params["w_hh"], ((0, Hp - H), (0, 0)))).astype(jnp.bfloat16)     # [Hp, G]
    b_lstm = pack_gates(params["b_lstm"]).astype(jnp.float32)                    # [1, G]
    w_slot = jnp.pad(params["w_slot"], ((0, Hp - H), (0, Sp - S))).astype(jnp.bfloat16)
    b_slot = jnp.pad(params["b_slot"], ((0, 0), (0, Sp - S))).astype(jnp.float32)
    w_int = jnp.pad(params["w_int"], ((0, Hp - H), (0, Ip - I))).astype(jnp.bfloat16)
    b_int = jnp.pad(params["b_int"], ((0, 0), (0, Ip - I))).astype(jnp.float32)

    # --- gather embeddings directly in time-major order [T, Bp, E] ---
    # TODO(synk): the data-dependent embedding gather stays in XLA; fusing it
    # would need scalar-prefetched token ids + a pl.Element row-gather BlockSpec.
    utt_p = jnp.zeros((Bp, T), jnp.int32).at[:B, :].set(utterance.astype(jnp.int32))
    tok_tm = jnp.transpose(utt_p, (1, 0)).reshape(T * Bp)           # tiny int transpose
    emb_tm = jnp.take(params["emb"].astype(jnp.bfloat16), tok_tm,
                      axis=0).reshape(T, Bp, E)

    # --- validity mask precomputed once: nonzero while t < len ---
    lens_p = jnp.zeros((Bp,), jnp.int32).at[:B].set(seq_lengths.astype(jnp.int32))
    mask = (jnp.arange(T, dtype=jnp.int32)[:, None] < lens_p[None, :]
            ).astype(jnp.float32).reshape(T, Bp, 1)

    # --- VMEM limit sized from the actual per-tile footprint ---
    tile_rows = T * Bt
    est = (tile_rows * G * 2 + tile_rows * Hp * 2                    # bf16 scratches
           + 2 * (tile_rows * E * 2 + tile_rows * 4                  # emb + mask tiles
                  + tile_rows * Sp * 4 + Bt * Ip * 4)                # output tiles
           + 2 * (E * G * 2 + Hp * G * 2 + G * 4                     # weights (dbl-buf)
                  + Hp * Sp * 2 + Sp * 4 + Hp * Ip * 2 + Ip * 4))
    try:
        cap = int(pltpu.get_tpu_info().vmem_capacity_bytes * 3 // 4)  # 48 MiB on v7x
    except Exception:
        cap = 48 * 1024 * 1024
    vmem_limit = int(min(max(est + (4 << 20), 16 << 20), max(cap, 32 << 20)))

    in_specs = [
        pl.BlockSpec((T, Bt, E), lambda b: (0, b, 0)),      # emb  (batch-tiled)
        pl.BlockSpec((T, Bt, 1), lambda b: (0, b, 0)),      # mask (batch-tiled)
        pl.BlockSpec((E, G), lambda b: (0, 0)),             # w_ih
        pl.BlockSpec((Hp, G), lambda b: (0, 0)),            # w_hh
        pl.BlockSpec((1, G), lambda b: (0, 0)),             # b_lstm
        pl.BlockSpec((Hp, Sp), lambda b: (0, 0)),           # w_slot
        pl.BlockSpec((1, Sp), lambda b: (0, 0)),            # b_slot
        pl.BlockSpec((Hp, Ip), lambda b: (0, 0)),           # w_int
        pl.BlockSpec((1, Ip), lambda b: (0, 0)),            # b_int
    ]
    out_specs = (
        pl.BlockSpec((T, Bt, Sp), lambda b: (0, b, 0)),     # slots
        pl.BlockSpec((Bt, Ip), lambda b: (b, 0)),           # intent
    )

    slots_tm, intent_p = pl.pallas_call(
        model_ias_kernel,
        out_shape=(jax.ShapeDtypeStruct((T, Bp, Sp), jnp.float32),
                   jax.ShapeDtypeStruct((Bp, Ip), jnp.float32)),
        grid_spec=pltpu.PrefetchScalarGridSpec(
            num_scalar_prefetch=0,
            grid=(n_tiles,),
            in_specs=in_specs,
            out_specs=out_specs,
            scratch_shapes=[pltpu.VMEM((T * Bt, G), jnp.bfloat16),   # gates_x
                            pltpu.VMEM((T * Bt, Hp), jnp.bfloat16)]),  # hidden states
        compiler_params=pltpu.CompilerParams(
            dimension_semantics=("parallel",),
            vmem_limit_bytes=vmem_limit),
    )(emb_tm, mask, w_ih, w_hh, b_lstm, w_slot, b_slot, w_int, b_int)

    # [T, Bp, Sp] -> [Bp, Sp, T] -> slice to [B, S, T]  (== slots.permute(0, 2, 1))
    slots = jnp.transpose(slots_tm, (1, 2, 0))[:B, :S, :]
    intent = intent_p[:B, :I]
    return slots, intent


def init_params(key, vocab_len, emb_size, hid_size, out_slot, out_int,
                pad_index=0):
    ks = jax.random.split(key, 9)
    scale = 1.0 / jnp.sqrt(hid_size)
    emb = 0.1 * jax.random.normal(ks[0], (vocab_len, emb_size), jnp.float32)
    emb = emb.at[pad_index].set(0.0)                        # padding_idx row = 0
    uni = lambda k, shape: jax.random.uniform(k, shape, jnp.float32, -scale, scale)
    return {
        "emb": emb,
        "w_ih": uni(ks[1], (emb_size, 4 * hid_size)),       # == weight_ih_l0.T
        "w_hh": uni(ks[2], (hid_size, 4 * hid_size)),       # == weight_hh_l0.T
        "b_lstm": uni(ks[3], (1, 4 * hid_size)),            # b_ih + b_hh combined
        "w_slot": uni(ks[4], (hid_size, out_slot)),
        "b_slot": uni(ks[5], (1, out_slot)),
        "w_int": uni(ks[6], (hid_size, out_int)),
        "b_int": uni(ks[7], (1, out_int)),
    }


def reference_forward(params, utterance, seq_lengths):
    """Pure-JAX f32 reference of the module semantics, for verification."""
    utt_emb = jnp.take(params["emb"], utterance, axis=0)
    B, T, _ = utt_emb.shape
    H = params["w_hh"].shape[0]
    h = jnp.zeros((B, H), jnp.float32)
    c = jnp.zeros((B, H), jnp.float32)
    outs = []
    for t in range(T):
        x_t = utt_emb[:, t, :]
        gates = x_t @ params["w_ih"] + h @ params["w_hh"] + params["b_lstm"]
        i_g = jax.nn.sigmoid(gates[:, :H])
        f_g = jax.nn.sigmoid(gates[:, H:2 * H])
        g_g = jnp.tanh(gates[:, 2 * H:3 * H])
        o_g = jax.nn.sigmoid(gates[:, 3 * H:])
        c_new = f_g * c + i_g * g_g
        h_new = o_g * jnp.tanh(c_new)
        valid = (seq_lengths > t)[:, None]
        outs.append(jnp.where(valid, h_new, 0.0))
        h = jnp.where(valid, h_new, h)
        c = jnp.where(valid, c_new, c)
    utt_encoded = jnp.stack(outs, axis=1)                   # [B, T, H]
    slots = utt_encoded @ params["w_slot"] + params["b_slot"][0]
    intent = h @ params["w_int"] + params["b_int"][0]
    return jnp.transpose(slots, (0, 2, 1)), intent


if __name__ == "__main__":
    # Small shapes consistent with the module.
    vocab_len, emb_size, hid_size = 50, 16, 32
    out_slot, out_int = 12, 8
    B, T, pad_index = 2, 8, 0

    key = jax.random.PRNGKey(0)
    pk, tk = jax.random.split(key)
    params = init_params(pk, vocab_len, emb_size, hid_size, out_slot, out_int,
                         pad_index)

    # lengths sorted descending (pack_padded_sequence enforce_sorted=True)
    seq_lengths = jnp.array([8, 5], dtype=jnp.int32)
    tokens = jax.random.randint(tk, (B, T), 1, vocab_len, dtype=jnp.int32)
    pos = jnp.arange(T)[None, :]
    utterance = jnp.where(pos < seq_lengths[:, None], tokens, pad_index)

    slots, intent = jax.jit(model_ias_forward)(params, utterance, seq_lengths)
    jax.block_until_ready((slots, intent))

    slots_ref, intent_ref = reference_forward(params, utterance, seq_lengths)
    assert slots.shape == (B, out_slot, T) and intent.shape == (B, out_int)
    # The kernel uses bf16 MXU operands / bf16 scratches with f32 accumulation;
    # compare against the f32 reference with a tolerance covering bf16 rounding.
    assert jnp.allclose(slots, slots_ref, rtol=2e-2, atol=2e-2), \
        float(jnp.max(jnp.abs(slots - slots_ref)))
    assert jnp.allclose(intent, intent_ref, rtol=2e-2, atol=2e-2), \
        float(jnp.max(jnp.abs(intent - intent_ref)))

    print("KERNEL_OK")
</pallas_src>

<mosaic_0001>
module attributes {stable_mosaic.version = 11 : i64} {
  func.func @model_ias_kernel(%arg0: i32, %arg1: memref<8x8x16xbf16, #tpu.memory_space<vmem>>, %arg2: memref<8x8x1xf32, #tpu.memory_space<vmem>>, %arg3: memref<16x512xbf16, #tpu.memory_space<vmem>>, %arg4: memref<128x512xbf16, #tpu.memory_space<vmem>>, %arg5: memref<1x512xf32, #tpu.memory_space<vmem>>, %arg6: memref<128x128xbf16, #tpu.memory_space<vmem>>, %arg7: memref<1x128xf32, #tpu.memory_space<vmem>>, %arg8: memref<128x128xbf16, #tpu.memory_space<vmem>>, %arg9: memref<1x128xf32, #tpu.memory_space<vmem>>, %arg10: memref<8x8x128xf32, #tpu.memory_space<vmem>>, %arg11: memref<8x128xf32, #tpu.memory_space<vmem>>, %arg12: memref<64x512xbf16, #tpu.memory_space<vmem>>, %arg13: memref<64x128xbf16, #tpu.memory_space<vmem>>) attributes {dimension_semantics = [#tpu.dimension_semantics<parallel>], iteration_bounds = array<i64: 1>, scalar_prefetch = 0 : i64, scratch_operands = 2 : i64, tpu.core_type = #tpu.core_type<tc>, window_params = [{transform_indices = @transform_0, window_bounds = array<i64: 8, 8, 16>}, {transform_indices = @transform_1, window_bounds = array<i64: 8, 8, 1>}, {pipeline_mode = #tpu.pipeline_mode<synchronous>, transform_indices = @transform_2, window_bounds = array<i64: 16, 512>}, {pipeline_mode = #tpu.pipeline_mode<synchronous>, transform_indices = @transform_3, window_bounds = array<i64: 128, 512>}, {pipeline_mode = #tpu.pipeline_mode<synchronous>, transform_indices = @transform_4, window_bounds = array<i64: 1, 512>}, {pipeline_mode = #tpu.pipeline_mode<synchronous>, transform_indices = @transform_5, window_bounds = array<i64: 128, 128>}, {pipeline_mode = #tpu.pipeline_mode<synchronous>, transform_indices = @transform_6, window_bounds = array<i64: 1, 128>}, {pipeline_mode = #tpu.pipeline_mode<synchronous>, transform_indices = @transform_7, window_bounds = array<i64: 128, 128>}, {pipeline_mode = #tpu.pipeline_mode<synchronous>, transform_indices = @transform_8, window_bounds = array<i64: 1, 128>}, {transform_indices = @transform_9, window_bounds = array<i64: 8, 8, 128>}, {transform_indices = @transform_10, window_bounds = array<i64: 8, 128>}]} {
    %c0 = arith.constant 0 : index
    %c0_0 = arith.constant 0 : index
    %c0_1 = arith.constant 0 : index
    %0 = vector.load %arg1[%c0, %c0_0, %c0_1] : memref<8x8x16xbf16, #tpu.memory_space<vmem>>, vector<8x8x16xbf16>
    %1 = vector.shape_cast %0 : vector<8x8x16xbf16> to vector<64x16xbf16>
    %c0_2 = arith.constant 0 : index
    %c0_3 = arith.constant 0 : index
    %2 = vector.load %arg3[%c0_2, %c0_3] : memref<16x512xbf16, #tpu.memory_space<vmem>>, vector<16x512xbf16>
    %cst = arith.constant dense<0.000000e+00> : vector<64x512xf32>
    %3 = tpu.matmul %1, %2, %cst {dimension_numbers = #tpu.dot_dimension_numbers<[1], [0], [0], [1], [0, 0, 1, 1], [], []>} : vector<64x16xbf16>, vector<16x512xbf16>, vector<64x512xf32> -> vector<64x512xf32>
    %4 = arith.truncf %3 : vector<64x512xf32> to vector<64x512xbf16>
    %c0_4 = arith.constant 0 : index
    %c0_5 = arith.constant 0 : index
    %5 = vector.load %arg12[%c0_4, %c0_5] : memref<64x512xbf16, #tpu.memory_space<vmem>>, vector<64x512xbf16>
    tpu.vector_store %arg12[%c0_4, %c0_5], %4 {strides = array<i32>} : memref<64x512xbf16, #tpu.memory_space<vmem>>, vector<64x512xbf16>,
    %c0_6 = arith.constant 0 : index
    %c0_7 = arith.constant 0 : index
    %6 = vector.load %arg4[%c0_6, %c0_7] : memref<128x512xbf16, #tpu.memory_space<vmem>>, vector<128x512xbf16>
    %c0_8 = arith.constant 0 : index
    %c0_9 = arith.constant 0 : index
    %7 = vector.load %arg5[%c0_8, %c0_9] : memref<1x512xf32, #tpu.memory_space<vmem>>, vector<1x512xf32>
    %cst_10 = arith.constant 0.000000e+00 : f32
    %8 = vector.broadcast %cst_10 : f32 to vector<8x128xf32>
    %cst_11 = arith.constant 0.000000e+00 : f32
    %9 = vector.broadcast %cst_11 : f32 to vector<8x128xf32>
    %c0_12 = arith.constant 0 : index
    %c0_13 = arith.constant 0 : index
    %10 = vector.load %arg12[%c0_12, %c0_13] : memref<64x512xbf16, #tpu.memory_space<vmem>>, vector<8x512xbf16>
    %11 = arith.truncf %8 : vector<8x128xf32> to vector<8x128xbf16>
    %cst_14 = arith.constant dense<0.000000e+00> : vector<8x512xf32>
    %12 = tpu.matmul %11, %6, %cst_14 {dimension_numbers = #tpu.dot_dimension_numbers<[1], [0], [0], [1], [0, 0, 1, 1], [], []>} : vector<8x128xbf16>, vector<128x512xbf16>, vector<8x512xf32> -> vector<8x512xf32>
    %13 = arith.extf %10 : vector<8x512xbf16> to vector<8x512xf32>
    %14 = arith.addf %12, %13 : vector<8x512xf32>
    %15 = vector.broadcast %7 : vector<1x512xf32> to vector<8x512xf32>
    %16 = arith.addf %14, %15 : vector<8x512xf32>
    %17 = vector.extract_strided_slice %16 {offsets = [0, 0], sizes = [8, 384], strides = [1, 1]} : vector<8x512xf32> to vector<8x384xf32>
    %18 = arith.negf %17 : vector<8x384xf32>
    %19 = math.exp %18 : vector<8x384xf32>
    %cst_15 = arith.constant 1.000000e+00 : f32
    %20 = vector.broadcast %cst_15 : f32 to vector<8x384xf32>
    %21 = arith.addf %20, %19 : vector<8x384xf32>
    %22 = arith.divf %20, %21 : vector<8x384xf32>
    %23 = vector.extract_strided_slice %22 {offsets = [0, 0], sizes = [8, 128], strides = [1, 1]} : vector<8x384xf32> to vector<8x128xf32>
    %24 = vector.extract_strided_slice %22 {offsets = [0, 128], sizes = [8, 128], strides = [1, 1]} : vector<8x384xf32> to vector<8x128xf32>
    %25 = vector.extract_strided_slice %22 {offsets = [0, 256], sizes = [8, 128], strides = [1, 1]} : vector<8x384xf32> to vector<8x128xf32>
    %26 = vector.extract_strided_slice %16 {offsets = [0, 384], sizes = [8, 128], strides = [1, 1]} : vector<8x512xf32> to vector<8x128xf32>
    %27 = math.tanh %26 : vector<8x128xf32>
    %28 = arith.mulf %24, %9 : vector<8x128xf32>
    %29 = arith.mulf %23, %27 : vector<8x128xf32>
    %30 = arith.addf %28, %29 : vector<8x128xf32>
    %31 = math.tanh %30 : vector<8x128xf32>
    %32 = arith.mulf %25, %31 : vector<8x128xf32>
    %c0_16 = arith.constant 0 : index
    %c0_17 = arith.constant 0 : index
    %c0_18 = arith.constant 0 : index
    %33 = vector.load %arg2[%c0_16, %c0_17, %c0_18] : memref<8x8x1xf32, #tpu.memory_space<vmem>>, vector<1x8x1xf32>
    %34 = vector.shape_cast %33 : vector<1x8x1xf32> to vector<8x1xf32>
    %cst_19 = arith.constant 0.000000e+00 : f32
    %35 = vector.broadcast %cst_19 : f32 to vector<8x1xf32>
    %36 = arith.cmpf one, %34, %35 : vector<8x1xf32>
    %37 = vector.shape_cast %36 : vector<8x1xi1> to vector<8x1xi1>
    %38 = vector.broadcast %37 : vector<8x1xi1> to vector<8x128xi1>
    %39 = arith.select %38, %32, %8 : vector<8x128xi1>, vector<8x128xf32>
    %40 = vector.shape_cast %36 : vector<8x1xi1> to vector<8x1xi1>
    %41 = vector.broadcast %40 : vector<8x1xi1> to vector<8x128xi1>
    %42 = arith.select %41, %30, %9 : vector<8x128xi1>, vector<8x128xf32>
    %43 = arith.truncf %39 : vector<8x128xf32> to vector<8x128xbf16>
    %cst_20 = arith.constant 0.000000e+00 : bf16
    %44 = vector.broadcast %cst_20 : bf16 to vector<8x128xbf16>
    %45 = vector.shape_cast %36 : vector<8x1xi1> to vector<8x1xi1>
    %46 = vector.broadcast %45 : vector<8x1xi1> to vector<8x128xi1>
    %47 = arith.select %46, %43, %44 : vector<8x128xi1>, vector<8x128xbf16>
    %c0_21 = arith.constant 0 : index
    %c0_22 = arith.constant 0 : index
    %48 = vector.load %arg13[%c0_21, %c0_22] : memref<64x128xbf16, #tpu.memory_space<vmem>>, vector<8x128xbf16>
    tpu.vector_store %arg13[%c0_21, %c0_22], %47 {strides = array<i32>} : memref<64x128xbf16, #tpu.memory_space<vmem>>, vector<8x128xbf16>,
    %c8 = arith.constant 8 : index
    %c0_23 = arith.constant 0 : index
    %49 = vector.load %arg12[%c8, %c0_23] : memref<64x512xbf16, #tpu.memory_space<vmem>>, vector<8x512xbf16>
    %50 = arith.truncf %39 : vector<8x128xf32> to vector<8x128xbf16>
    %cst_24 = arith.constant dense<0.000000e+00> : vector<8x512xf32>
    %51 = tpu.matmul %50, %6, %cst_24 {dimension_numbers = #tpu.dot_dimension_numbers<[1], [0], [0], [1], [0, 0, 1, 1], [], []>} : vector<8x128xbf16>, vector<128x512xbf16>, vector<8x512xf32> -> vector<8x512xf32>
    %52 = arith.extf %49 : vector<8x512xbf16> to vector<8x512xf32>
    %53 = arith.addf %51, %52 : vector<8x512xf32>
    %54 = vector.broadcast %7 : vector<1x512xf32> to vector<8x512xf32>
    %55 = arith.addf %53, %54 : vector<8x512xf32>
    %56 = vector.extract_strided_slice %55 {offsets = [0, 0], sizes = [8, 384], strides = [1, 1]} : vector<8x512xf32> to vector<8x384xf32>
    %57 = arith.negf %56 : vector<8x384xf32>
    %58 = math.exp %57 : vector<8x384xf32>
    %cst_25 = arith.constant 1.000000e+00 : f32
    %59 = vector.broadcast %cst_25 : f32 to vector<8x384xf32>
    %60 = arith.addf %59, %58 : vector<8x384xf32>
    %61 = arith.divf %59, %60 : vector<8x384xf32>
    %62 = vector.extract_strided_slice %61 {offsets = [0, 0], sizes = [8, 128], strides = [1, 1]} : vector<8x384xf32> to vector<8x128xf32>
    %63 = vector.extract_strided_slice %61 {offsets = [0, 128], sizes = [8, 128], strides = [1, 1]} : vector<8x384xf32> to vector<8x128xf32>
    %64 = vector.extract_strided_slice %61 {offsets = [0, 256], sizes = [8, 128], strides = [1, 1]} : vector<8x384xf32> to vector<8x128xf32>
    %65 = vector.extract_strided_slice %55 {offsets = [0, 384], sizes = [8, 128], strides = [1, 1]} : vector<8x512xf32> to vector<8x128xf32>
    %66 = math.tanh %65 : vector<8x128xf32>
    %67 = arith.mulf %63, %42 : vector<8x128xf32>
    %68 = arith.mulf %62, %66 : vector<8x128xf32>
    %69 = arith.addf %67, %68 : vector<8x128xf32>
    %70 = math.tanh %69 : vector<8x128xf32>
    %71 = arith.mulf %64, %70 : vector<8x128xf32>
    %c1 = arith.constant 1 : index
    %c0_26 = arith.constant 0 : index
    %c0_27 = arith.constant 0 : index
    %72 = vector.load %arg2[%c1, %c0_26, %c0_27] : memref<8x8x1xf32, #tpu.memory_space<vmem>>, vector<1x8x1xf32>
    %73 = vector.shape_cast %72 : vector<1x8x1xf32> to vector<8x1xf32>
    %cst_28 = arith.constant 0.000000e+00 : f32
    %74 = vector.broadcast %cst_28 : f32 to vector<8x1xf32>
    %75 = arith.cmpf one, %73, %74 : vector<8x1xf32>
    %76 = vector.shape_cast %75 : vector<8x1xi1> to vector<8x1xi1>
    %77 = vector.broadcast %76 : vector<8x1xi1> to vector<8x128xi1>
    %78 = arith.select %77, %71, %39 : vector<8x128xi1>, vector<8x128xf32>
    %79 = vector.shape_cast %75 : vector<8x1xi1> to vector<8x1xi1>
    %80 = vector.broadcast %79 : vector<8x1xi1> to vector<8x128xi1>
    %81 = arith.select %80, %69, %42 : vector<8x128xi1>, vector<8x128xf32>
    %82 = arith.truncf %78 : vector<8x128xf32> to vector<8x128xbf16>
    %cst_29 = arith.constant 0.000000e+00 : bf16
    %83 = vector.broadcast %cst_29 : bf16 to vector<8x128xbf16>
    %84 = vector.shape_cast %75 : vector<8x1xi1> to vector<8x1xi1>
    %85 = vector.broadcast %84 : vector<8x1xi1> to vector<8x128xi1>
    %86 = arith.select %85, %82, %83 : vector<8x128xi1>, vector<8x128xbf16>
    %c8_30 = arith.constant 8 : index
    %c0_31 = arith.constant 0 : index
    %87 = vector.load %arg13[%c8_30, %c0_31] : memref<64x128xbf16, #tpu.memory_space<vmem>>, vector<8x128xbf16>
    tpu.vector_store %arg13[%c8_30, %c0_31], %86 {strides = array<i32>} : memref<64x128xbf16, #tpu.memory_space<vmem>>, vector<8x128xbf16>,
    %c16 = arith.constant 16 : index
    %c0_32 = arith.constant 0 : index
    %88 = vector.load %arg12[%c16, %c0_32] : memref<64x512xbf16, #tpu.memory_space<vmem>>, vector<8x512xbf16>
    %89 = arith.truncf %78 : vector<8x128xf32> to vector<8x128xbf16>
    %cst_33 = arith.constant dense<0.000000e+00> : vector<8x512xf32>
    %90 = tpu.matmul %89, %6, %cst_33 {dimension_numbers = #tpu.dot_dimension_numbers<[1], [0], [0], [1], [0, 0, 1, 1], [], []>} : vector<8x128xbf16>, vector<128x512xbf16>, vector<8x512xf32> -> vector<8x512xf32>
    %91 = arith.extf %88 : vector<8x512xbf16> to vector<8x512xf32>
    %92 = arith.addf %90, %91 : vector<8x512xf32>
    %93 = vector.broadcast %7 : vector<1x512xf32> to vector<8x512xf32>
    %94 = arith.addf %92, %93 : vector<8x512xf32>
    %95 = vector.extract_strided_slice %94 {offsets = [0, 0], sizes = [8, 384], strides = [1, 1]} : vector<8x512xf32> to vector<8x384xf32>
    %96 = arith.negf %95 : vector<8x384xf32>
    %97 = math.exp %96 : vector<8x384xf32>
    %cst_34 = arith.constant 1.000000e+00 : f32
    %98 = vector.broadcast %cst_34 : f32 to vector<8x384xf32>
    %99 = arith.addf %98, %97 : vector<8x384xf32>
    %100 = arith.divf %98, %99 : vector<8x384xf32>
    %101 = vector.extract_strided_slice %100 {offsets = [0, 0], sizes = [8, 128], strides = [1, 1]} : vector<8x384xf32> to vector<8x128xf32>
    %102 = vector.extract_strided_slice %100 {offsets = [0, 128], sizes = [8, 128], strides = [1, 1]} : vector<8x384xf32> to vector<8x128xf32>
    %103 = vector.extract_strided_slice %100 {offsets = [0, 256], sizes = [8, 128], strides = [1, 1]} : vector<8x384xf32> to vector<8x128xf32>
    %104 = vector.extract_strided_slice %94 {offsets = [0, 384], sizes = [8, 128], strides = [1, 1]} : vector<8x512xf32> to vector<8x128xf32>
    %105 = math.tanh %104 : vector<8x128xf32>
    %106 = arith.mulf %102, %81 : vector<8x128xf32>
    %107 = arith.mulf %101, %105 : vector<8x128xf32>
    %108 = arith.addf %106, %107 : vector<8x128xf32>
    %109 = math.tanh %108 : vector<8x128xf32>
    %110 = arith.mulf %103, %109 : vector<8x128xf32>
    %c2 = arith.constant 2 : index
    %c0_35 = arith.constant 0 : index
    %c0_36 = arith.constant 0 : index
    %111 = vector.load %arg2[%c2, %c0_35, %c0_36] : memref<8x8x1xf32, #tpu.memory_space<vmem>>, vector<1x8x1xf32>
    %112 = vector.shape_cast %111 : vector<1x8x1xf32> to vector<8x1xf32>
    %cst_37 = arith.constant 0.000000e+00 : f32
    %113 = vector.broadcast %cst_37 : f32 to vector<8x1xf32>
    %114 = arith.cmpf one, %112, %113 : vector<8x1xf32>
    %115 = vector.shape_cast %114 : vector<8x1xi1> to vector<8x1xi1>
    %116 = vector.broadcast %115 : vector<8x1xi1> to vector<8x128xi1>
    %117 = arith.select %116, %110, %78 : vector<8x128xi1>, vector<8x128xf32>
    %118 = vector.shape_cast %114 : vector<8x1xi1> to vector<8x1xi1>
    %119 = vector.broadcast %118 : vector<8x1xi1> to vector<8x128xi1>
    %120 = arith.select %119, %108, %81 : vector<8x128xi1>, vector<8x128xf32>
    %121 = arith.truncf %117 : vector<8x128xf32> to vector<8x128xbf16>
    %cst_38 = arith.constant 0.000000e+00 : bf16
    %122 = vector.broadcast %cst_38 : bf16 to vector<8x128xbf16>
    %123 = vector.shape_cast %114 : vector<8x1xi1> to vector<8x1xi1>
    %124 = vector.broadcast %123 : vector<8x1xi1> to vector<8x128xi1>
    %125 = arith.select %124, %121, %122 : vector<8x128xi1>, vector<8x128xbf16>
    %c16_39 = arith.constant 16 : index
    %c0_40 = arith.constant 0 : index
    %126 = vector.load %arg13[%c16_39, %c0_40] : memref<64x128xbf16, #tpu.memory_space<vmem>>, vector<8x128xbf16>
    tpu.vector_store %arg13[%c16_39, %c0_40], %125 {strides = array<i32>} : memref<64x128xbf16, #tpu.memory_space<vmem>>, vector<8x128xbf16>,
    %c24 = arith.constant 24 : index
    %c0_41 = arith.constant 0 : index
    %127 = vector.load %arg12[%c24, %c0_41] : memref<64x512xbf16, #tpu.memory_space<vmem>>, vector<8x512xbf16>
    %128 = arith.truncf %117 : vector<8x128xf32> to vector<8x128xbf16>
    %cst_42 = arith.constant dense<0.000000e+00> : vector<8x512xf32>
    %129 = tpu.matmul %128, %6, %cst_42 {dimension_numbers = #tpu.dot_dimension_numbers<[1], [0], [0], [1], [0, 0, 1, 1], [], []>} : vector<8x128xbf16>, vector<128x512xbf16>, vector<8x512xf32> -> vector<8x512xf32>
    %130 = arith.extf %127 : vector<8x512xbf16> to vector<8x512xf32>
    %131 = arith.addf %129, %130 : vector<8x512xf32>
    %132 = vector.broadcast %7 : vector<1x512xf32> to vector<8x512xf32>
    %133 = arith.addf %131, %132 : vector<8x512xf32>
    %134 = vector.extract_strided_slice %133 {offsets = [0, 0], sizes = [8, 384], strides = [1, 1]} : vector<8x512xf32> to vector<8x384xf32>
    %135 = arith.negf %134 : vector<8x384xf32>
    %136 = math.exp %135 : vector<8x384xf32>
    %cst_43 = arith.constant 1.000000e+00 : f32
    %137 = vector.broadcast %cst_43 : f32 to vector<8x384xf32>
    %138 = arith.addf %137, %136 : vector<8x384xf32>
    %139 = arith.divf %137, %138 : vector<8x384xf32>
    %140 = vector.extract_strided_slice %139 {offsets = [0, 0], sizes = [8, 128], strides = [1, 1]} : vector<8x384xf32> to vector<8x128xf32>
    %141 = vector.extract_strided_slice %139 {offsets = [0, 128], sizes = [8, 128], strides = [1, 1]} : vector<8x384xf32> to vector<8x128xf32>
    %142 = vector.extract_strided_slice %139 {offsets = [0, 256], sizes = [8, 128], strides = [1, 1]} : vector<8x384xf32> to vector<8x128xf32>
    %143 = vector.extract_strided_slice %133 {offsets = [0, 384], sizes = [8, 128], strides = [1, 1]} : vector<8x512xf32> to vector<8x128xf32>
    %144 = math.tanh %143 : vector<8x128xf32>
    %145 = arith.mulf %141, %120 : vector<8x128xf32>
    %146 = arith.mulf %140, %144 : vector<8x128xf32>
    %147 = arith.addf %145, %146 : vector<8x128xf32>
    %148 = math.tanh %147 : vector<8x128xf32>
    %149 = arith.mulf %142, %148 : vector<8x128xf32>
    %c3 = arith.constant 3 : index
    %c0_44 = arith.constant 0 : index
    %c0_45 = arith.constant 0 : index
    %150 = vector.load %arg2[%c3, %c0_44, %c0_45] : memref<8x8x1xf32, #tpu.memory_space<vmem>>, vector<1x8x1xf32>
    %151 = vector.shape_cast %150 : vector<1x8x1xf32> to vector<8x1xf32>
    %cst_46 = arith.constant 0.000000e+00 : f32
    %152 = vector.broadcast %cst_46 : f32 to vector<8x1xf32>
    %153 = arith.cmpf one, %151, %152 : vector<8x1xf32>
    %154 = vector.shape_cast %153 : vector<8x1xi1> to vector<8x1xi1>
    %155 = vector.broadcast %154 : vector<8x1xi1> to vector<8x128xi1>
    %156 = arith.select %155, %149, %117 : vector<8x128xi1>, vector<8x128xf32>
    %157 = vector.shape_cast %153 : vector<8x1xi1> to vector<8x1xi1>
    %158 = vector.broadcast %157 : vector<8x1xi1> to vector<8x128xi1>
    %159 = arith.select %158, %147, %120 : vector<8x128xi1>, vector<8x128xf32>
    %160 = arith.truncf %156 : vector<8x128xf32> to vector<8x128xbf16>
    %cst_47 = arith.constant 0.000000e+00 : bf16
    %161 = vector.broadcast %cst_47 : bf16 to vector<8x128xbf16>
    %162 = vector.shape_cast %153 : vector<8x1xi1> to vector<8x1xi1>
    %163 = vector.broadcast %162 : vector<8x1xi1> to vector<8x128xi1>
    %164 = arith.select %163, %160, %161 : vector<8x128xi1>, vector<8x128xbf16>
    %c24_48 = arith.constant 24 : index
    %c0_49 = arith.constant 0 : index
    %165 = vector.load %arg13[%c24_48, %c0_49] : memref<64x128xbf16, #tpu.memory_space<vmem>>, vector<8x128xbf16>
    tpu.vector_store %arg13[%c24_48, %c0_49], %164 {strides = array<i32>} : memref<64x128xbf16, #tpu.memory_space<vmem>>, vector<8x128xbf16>,
    %c32 = arith.constant 32 : index
    %c0_50 = arith.constant 0 : index
    %166 = vector.load %arg12[%c32, %c0_50] : memref<64x512xbf16, #tpu.memory_space<vmem>>, vector<8x512xbf16>
    %167 = arith.truncf %156 : vector<8x128xf32> to vector<8x128xbf16>
    %cst_51 = arith.constant dense<0.000000e+00> : vector<8x512xf32>
    %168 = tpu.matmul %167, %6, %cst_51 {dimension_numbers = #tpu.dot_dimension_numbers<[1], [0], [0], [1], [0, 0, 1, 1], [], []>} : vector<8x128xbf16>, vector<128x512xbf16>, vector<8x512xf32> -> vector<8x512xf32>
    %169 = arith.extf %166 : vector<8x512xbf16> to vector<8x512xf32>
    %170 = arith.addf %168, %169 : vector<8x512xf32>
    %171 = vector.broadcast %7 : vector<1x512xf32> to vector<8x512xf32>
    %172 = arith.addf %170, %171 : vector<8x512xf32>
    %173 = vector.extract_strided_slice %172 {offsets = [0, 0], sizes = [8, 384], strides = [1, 1]} : vector<8x512xf32> to vector<8x384xf32>
    %174 = arith.negf %173 : vector<8x384xf32>
    %175 = math.exp %174 : vector<8x384xf32>
    %cst_52 = arith.constant 1.000000e+00 : f32
    %176 = vector.broadcast %cst_52 : f32 to vector<8x384xf32>
    %177 = arith.addf %176, %175 : vector<8x384xf32>
    %178 = arith.divf %176, %177 : vector<8x384xf32>
    %179 = vector.extract_strided_slice %178 {offsets = [0, 0], sizes = [8, 128], strides = [1, 1]} : vector<8x384xf32> to vector<8x128xf32>
    %180 = vector.extract_strided_slice %178 {offsets = [0, 128], sizes = [8, 128], strides = [1, 1]} : vector<8x384xf32> to vector<8x128xf32>
    %181 = vector.extract_strided_slice %178 {offsets = [0, 256], sizes = [8, 128], strides = [1, 1]} : vector<8x384xf32> to vector<8x128xf32>
    %182 = vector.extract_strided_slice %172 {offsets = [0, 384], sizes = [8, 128], strides = [1, 1]} : vector<8x512xf32> to vector<8x128xf32>
    %183 = math.tanh %182 : vector<8x128xf32>
    %184 = arith.mulf %180, %159 : vector<8x128xf32>
    %185 = arith.mulf %179, %183 : vector<8x128xf32>
    %186 = arith.addf %184, %185 : vector<8x128xf32>
    %187 = math.tanh %186 : vector<8x128xf32>
    %188 = arith.mulf %181, %187 : vector<8x128xf32>
    %c4 = arith.constant 4 : index
    %c0_53 = arith.constant 0 : index
    %c0_54 = arith.constant 0 : index
    %189 = vector.load %arg2[%c4, %c0_53, %c0_54] : memref<8x8x1xf32, #tpu.memory_space<vmem>>, vector<1x8x1xf32>
    %190 = vector.shape_cast %189 : vector<1x8x1xf32> to vector<8x1xf32>
    %cst_55 = arith.constant 0.000000e+00 : f32
    %191 = vector.broadcast %cst_55 : f32 to vector<8x1xf32>
    %192 = arith.cmpf one, %190, %191 : vector<8x1xf32>
    %193 = vector.shape_cast %192 : vector<8x1xi1> to vector<8x1xi1>
    %194 = vector.broadcast %193 : vector<8x1xi1> to vector<8x128xi1>
    %195 = arith.select %194, %188, %156 : vector<8x128xi1>, vector<8x128xf32>
    %196 = vector.shape_cast %192 : vector<8x1xi1> to vector<8x1xi1>
    %197 = vector.broadcast %196 : vector<8x1xi1> to vector<8x128xi1>
    %198 = arith.select %197, %186, %159 : vector<8x128xi1>, vector<8x128xf32>
    %199 = arith.truncf %195 : vector<8x128xf32> to vector<8x128xbf16>
    %cst_56 = arith.constant 0.000000e+00 : bf16
    %200 = vector.broadcast %cst_56 : bf16 to vector<8x128xbf16>
    %201 = vector.shape_cast %192 : vector<8x1xi1> to vector<8x1xi1>
    %202 = vector.broadcast %201 : vector<8x1xi1> to vector<8x128xi1>
    %203 = arith.select %202, %199, %200 : vector<8x128xi1>, vector<8x128xbf16>
    %c32_57 = arith.constant 32 : index
    %c0_58 = arith.constant 0 : index
    %204 = vector.load %arg13[%c32_57, %c0_58] : memref<64x128xbf16, #tpu.memory_space<vmem>>, vector<8x128xbf16>
    tpu.vector_store %arg13[%c32_57, %c0_58], %203 {strides = array<i32>} : memref<64x128xbf16, #tpu.memory_space<vmem>>, vector<8x128xbf16>,
    %c40 = arith.constant 40 : index
    %c0_59 = arith.constant 0 : index
    %205 = vector.load %arg12[%c40, %c0_59] : memref<64x512xbf16, #tpu.memory_space<vmem>>, vector<8x512xbf16>
    %206 = arith.truncf %195 : vector<8x128xf32> to vector<8x128xbf16>
    %cst_60 = arith.constant dense<0.000000e+00> : vector<8x512xf32>
    %207 = tpu.matmul %206, %6, %cst_60 {dimension_numbers = #tpu.dot_dimension_numbers<[1], [0], [0], [1], [0, 0, 1, 1], [], []>} : vector<8x128xbf16>, vector<128x512xbf16>, vector<8x512xf32> -> vector<8x512xf32>
    %208 = arith.extf %205 : vector<8x512xbf16> to vector<8x512xf32>
    %209 = arith.addf %207, %208 : vector<8x512xf32>
    %210 = vector.broadcast %7 : vector<1x512xf32> to vector<8x512xf32>
    %211 = arith.addf %209, %210 : vector<8x512xf32>
    %212 = vector.extract_strided_slice %211 {offsets = [0, 0], sizes = [8, 384], strides = [1, 1]} : vector<8x512xf32> to vector<8x384xf32>
    %213 = arith.negf %212 : vector<8x384xf32>
    %214 = math.exp %213 : vector<8x384xf32>
    %cst_61 = arith.constant 1.000000e+00 : f32
    %215 = vector.broadcast %cst_61 : f32 to vector<8x384xf32>
    %216 = arith.addf %215, %214 : vector<8x384xf32>
    %217 = arith.divf %215, %216 : vector<8x384xf32>
    %218 = vector.extract_strided_slice %217 {offsets = [0, 0], sizes = [8, 128], strides = [1, 1]} : vector<8x384xf32> to vector<8x128xf32>
    %219 = vector.extract_strided_slice %217 {offsets = [0, 128], sizes = [8, 128], strides = [1, 1]} : vector<8x384xf32> to vector<8x128xf32>
    %220 = vector.extract_strided_slice %217 {offsets = [0, 256], sizes = [8, 128], strides = [1, 1]} : vector<8x384xf32> to vector<8x128xf32>
    %221 = vector.extract_strided_slice %211 {offsets = [0, 384], sizes = [8, 128], strides = [1, 1]} : vector<8x512xf32> to vector<8x128xf32>
    %222 = math.tanh %221 : vector<8x128xf32>
    %223 = arith.mulf %219, %198 : vector<8x128xf32>
    %224 = arith.mulf %218, %222 : vector<8x128xf32>
    %225 = arith.addf %223, %224 : vector<8x128xf32>
    %226 = math.tanh %225 : vector<8x128xf32>
    %227 = arith.mulf %220, %226 : vector<8x128xf32>
    %c5 = arith.constant 5 : index
    %c0_62 = arith.constant 0 : index
    %c0_63 = arith.constant 0 : index
    %228 = vector.load %arg2[%c5, %c0_62, %c0_63] : memref<8x8x1xf32, #tpu.memory_space<vmem>>, vector<1x8x1xf32>
    %229 = vector.shape_cast %228 : vector<1x8x1xf32> to vector<8x1xf32>
    %cst_64 = arith.constant 0.000000e+00 : f32
    %230 = vector.broadcast %cst_64 : f32 to vector<8x1xf32>
    %231 = arith.cmpf one, %229, %230 : vector<8x1xf32>
    %232 = vector.shape_cast %231 : vector<8x1xi1> to vector<8x1xi1>
    %233 = vector.broadcast %232 : vector<8x1xi1> to vector<8x128xi1>
    %234 = arith.select %233, %227, %195 : vector<8x128xi1>, vector<8x128xf32>
    %235 = vector.shape_cast %231 : vector<8x1xi1> to vector<8x1xi1>
    %236 = vector.broadcast %235 : vector<8x1xi1> to vector<8x128xi1>
    %237 = arith.select %236, %225, %198 : vector<8x128xi1>, vector<8x128xf32>
    %238 = arith.truncf %234 : vector<8x128xf32> to vector<8x128xbf16>
    %cst_65 = arith.constant 0.000000e+00 : bf16
    %239 = vector.broadcast %cst_65 : bf16 to vector<8x128xbf16>
    %240 = vector.shape_cast %231 : vector<8x1xi1> to vector<8x1xi1>
    %241 = vector.broadcast %240 : vector<8x1xi1> to vector<8x128xi1>
    %242 = arith.select %241, %238, %239 : vector<8x128xi1>, vector<8x128xbf16>
    %c40_66 = arith.constant 40 : index
    %c0_67 = arith.constant 0 : index
    %243 = vector.load %arg13[%c40_66, %c0_67] : memref<64x128xbf16, #tpu.memory_space<vmem>>, vector<8x128xbf16>
    tpu.vector_store %arg13[%c40_66, %c0_67], %242 {strides = array<i32>} : memref<64x128xbf16, #tpu.memory_space<vmem>>, vector<8x128xbf16>,
    %c48 = arith.constant 48 : index
    %c0_68 = arith.constant 0 : index
    %244 = vector.load %arg12[%c48, %c0_68] : memref<64x512xbf16, #tpu.memory_space<vmem>>, vector<8x512xbf16>
    %245 = arith.truncf %234 : vector<8x128xf32> to vector<8x128xbf16>
    %cst_69 = arith.constant dense<0.000000e+00> : vector<8x512xf32>
    %246 = tpu.matmul %245, %6, %cst_69 {dimension_numbers = #tpu.dot_dimension_numbers<[1], [0], [0], [1], [0, 0, 1, 1], [], []>} : vector<8x128xbf16>, vector<128x512xbf16>, vector<8x512xf32> -> vector<8x512xf32>
    %247 = arith.extf %244 : vector<8x512xbf16> to vector<8x512xf32>
    %248 = arith.addf %246, %247 : vector<8x512xf32>
    %249 = vector.broadcast %7 : vector<1x512xf32> to vector<8x512xf32>
    %250 = arith.addf %248, %249 : vector<8x512xf32>
    %251 = vector.extract_strided_slice %250 {offsets = [0, 0], sizes = [8, 384], strides = [1, 1]} : vector<8x512xf32> to vector<8x384xf32>
    %252 = arith.negf %251 : vector<8x384xf32>
    %253 = math.exp %252 : vector<8x384xf32>
    %cst_70 = arith.constant 1.000000e+00 : f32
    %254 = vector.broadcast %cst_70 : f32 to vector<8x384xf32>
    %255 = arith.addf %254, %253 : vector<8x384xf32>
    %256 = arith.divf %254, %255 : vector<8x384xf32>
    %257 = vector.extract_strided_slice %256 {offsets = [0, 0], sizes = [8, 128], strides = [1, 1]} : vector<8x384xf32> to vector<8x128xf32>
    %258 = vector.extract_strided_slice %256 {offsets = [0, 128], sizes = [8, 128], strides = [1, 1]} : vector<8x384xf32> to vector<8x128xf32>
    %259 = vector.extract_strided_slice %256 {offsets = [0, 256], sizes = [8, 128], strides = [1, 1]} : vector<8x384xf32> to vector<8x128xf32>
    %260 = vector.extract_strided_slice %250 {offsets = [0, 384], sizes = [8, 128], strides = [1, 1]} : vector<8x512xf32> to vector<8x128xf32>
    %261 = math.tanh %260 : vector<8x128xf32>
    %262 = arith.mulf %258, %237 : vector<8x128xf32>
    %263 = arith.mulf %257, %261 : vector<8x128xf32>
    %264 = arith.addf %262, %263 : vector<8x128xf32>
    %265 = math.tanh %264 : vector<8x128xf32>
    %266 = arith.mulf %259, %265 : vector<8x128xf32>
    %c6 = arith.constant 6 : index
    %c0_71 = arith.constant 0 : index
    %c0_72 = arith.constant 0 : index
    %267 = vector.load %arg2[%c6, %c0_71, %c0_72] : memref<8x8x1xf32, #tpu.memory_space<vmem>>, vector<1x8x1xf32>
    %268 = vector.shape_cast %267 : vector<1x8x1xf32> to vector<8x1xf32>
    %cst_73 = arith.constant 0.000000e+00 : f32
    %269 = vector.broadcast %cst_73 : f32 to vector<8x1xf32>
    %270 = arith.cmpf one, %268, %269 : vector<8x1xf32>
    %271 = vector.shape_cast %270 : vector<8x1xi1> to vector<8x1xi1>
    %272 = vector.broadcast %271 : vector<8x1xi1> to vector<8x128xi1>
    %273 = arith.select %272, %266, %234 : vector<8x128xi1>, vector<8x128xf32>
    %274 = vector.shape_cast %270 : vector<8x1xi1> to vector<8x1xi1>
    %275 = vector.broadcast %274 : vector<8x1xi1> to vector<8x128xi1>
    %276 = arith.select %275, %264, %237 : vector<8x128xi1>, vector<8x128xf32>
    %277 = arith.truncf %273 : vector<8x128xf32> to vector<8x128xbf16>
    %cst_74 = arith.constant 0.000000e+00 : bf16
    %278 = vector.broadcast %cst_74 : bf16 to vector<8x128xbf16>
    %279 = vector.shape_cast %270 : vector<8x1xi1> to vector<8x1xi1>
    %280 = vector.broadcast %279 : vector<8x1xi1> to vector<8x128xi1>
    %281 = arith.select %280, %277, %278 : vector<8x128xi1>, vector<8x128xbf16>
    %c48_75 = arith.constant 48 : index
    %c0_76 = arith.constant 0 : index
    %282 = vector.load %arg13[%c48_75, %c0_76] : memref<64x128xbf16, #tpu.memory_space<vmem>>, vector<8x128xbf16>
    tpu.vector_store %arg13[%c48_75, %c0_76], %281 {strides = array<i32>} : memref<64x128xbf16, #tpu.memory_space<vmem>>, vector<8x128xbf16>,
    %c56 = arith.constant 56 : index
    %c0_77 = arith.constant 0 : index
    %283 = vector.load %arg12[%c56, %c0_77] : memref<64x512xbf16, #tpu.memory_space<vmem>>, vector<8x512xbf16>
    %284 = arith.truncf %273 : vector<8x128xf32> to vector<8x128xbf16>
    %cst_78 = arith.constant dense<0.000000e+00> : vector<8x512xf32>
    %285 = tpu.matmul %284, %6, %cst_78 {dimension_numbers = #tpu.dot_dimension_numbers<[1], [0], [0], [1], [0, 0, 1, 1], [], []>} : vector<8x128xbf16>, vector<128x512xbf16>, vector<8x512xf32> -> vector<8x512xf32>
    %286 = arith.extf %283 : vector<8x512xbf16> to vector<8x512xf32>
    %287 = arith.addf %285, %286 : vector<8x512xf32>
    %288 = vector.broadcast %7 : vector<1x512xf32> to vector<8x512xf32>
    %289 = arith.addf %287, %288 : vector<8x512xf32>
    %290 = vector.extract_strided_slice %289 {offsets = [0, 0], sizes = [8, 384], strides = [1, 1]} : vector<8x512xf32> to vector<8x384xf32>
    %291 = arith.negf %290 : vector<8x384xf32>
    %292 = math.exp %291 : vector<8x384xf32>
    %cst_79 = arith.constant 1.000000e+00 : f32
    %293 = vector.broadcast %cst_79 : f32 to vector<8x384xf32>
    %294 = arith.addf %293, %292 : vector<8x384xf32>
    %295 = arith.divf %293, %294 : vector<8x384xf32>
    %296 = vector.extract_strided_slice %295 {offsets = [0, 0], sizes = [8, 128], strides = [1, 1]} : vector<8x384xf32> to vector<8x128xf32>
    %297 = vector.extract_strided_slice %295 {offsets = [0, 128], sizes = [8, 128], strides = [1, 1]} : vector<8x384xf32> to vector<8x128xf32>
    %298 = vector.extract_strided_slice %295 {offsets = [0, 256], sizes = [8, 128], strides = [1, 1]} : vector<8x384xf32> to vector<8x128xf32>
    %299 = vector.extract_strided_slice %289 {offsets = [0, 384], sizes = [8, 128], strides = [1, 1]} : vector<8x512xf32> to vector<8x128xf32>
    %300 = math.tanh %299 : vector<8x128xf32>
    %301 = arith.mulf %297, %276 : vector<8x128xf32>
    %302 = arith.mulf %296, %300 : vector<8x128xf32>
    %303 = arith.addf %301, %302 : vector<8x128xf32>
    %304 = math.tanh %303 : vector<8x128xf32>
    %305 = arith.mulf %298, %304 : vector<8x128xf32>
    %c7 = arith.constant 7 : index
    %c0_80 = arith.constant 0 : index
    %c0_81 = arith.constant 0 : index
    %306 = vector.load %arg2[%c7, %c0_80, %c0_81] : memref<8x8x1xf32, #tpu.memory_space<vmem>>, vector<1x8x1xf32>
    %307 = vector.shape_cast %306 : vector<1x8x1xf32> to vector<8x1xf32>
    %cst_82 = arith.constant 0.000000e+00 : f32
    %308 = vector.broadcast %cst_82 : f32 to vector<8x1xf32>
    %309 = arith.cmpf one, %307, %308 : vector<8x1xf32>
    %310 = vector.shape_cast %309 : vector<8x1xi1> to vector<8x1xi1>
    %311 = vector.broadcast %310 : vector<8x1xi1> to vector<8x128xi1>
    %312 = arith.select %311, %305, %273 : vector<8x128xi1>, vector<8x128xf32>
    %313 = arith.truncf %312 : vector<8x128xf32> to vector<8x128xbf16>
    %cst_83 = arith.constant 0.000000e+00 : bf16
    %314 = vector.broadcast %cst_83 : bf16 to vector<8x128xbf16>
    %315 = vector.shape_cast %309 : vector<8x1xi1> to vector<8x1xi1>
    %316 = vector.broadcast %315 : vector<8x1xi1> to vector<8x128xi1>
    %317 = arith.select %316, %313, %314 : vector<8x128xi1>, vector<8x128xbf16>
    %c56_84 = arith.constant 56 : index
    %c0_85 = arith.constant 0 : index
    %318 = vector.load %arg13[%c56_84, %c0_85] : memref<64x128xbf16, #tpu.memory_space<vmem>>, vector<8x128xbf16>
    tpu.vector_store %arg13[%c56_84, %c0_85], %317 {strides = array<i32>} : memref<64x128xbf16, #tpu.memory_space<vmem>>, vector<8x128xbf16>,
    %c0_86 = arith.constant 0 : index
    %c0_87 = arith.constant 0 : index
    %319 = vector.load %arg13[%c0_86, %c0_87] : memref<64x128xbf16, #tpu.memory_space<vmem>>, vector<64x128xbf16>
    %c0_88 = arith.constant 0 : index
    %c0_89 = arith.constant 0 : index
    %320 = vector.load %arg6[%c0_88, %c0_89] : memref<128x128xbf16, #tpu.memory_space<vmem>>, vector<128x128xbf16>
    %cst_90 = arith.constant dense<0.000000e+00> : vector<64x128xf32>
    %321 = tpu.matmul %319, %320, %cst_90 {dimension_numbers = #tpu.dot_dimension_numbers<[1], [0], [0], [1], [0, 0, 1, 1], [], []>} : vector<64x128xbf16>, vector<128x128xbf16>, vector<64x128xf32> -> vector<64x128xf32>
    %c0_91 = arith.constant 0 : index
    %c0_92 = arith.constant 0 : index
    %322 = vector.load %arg7[%c0_91, %c0_92] : memref<1x128xf32, #tpu.memory_space<vmem>>, vector<1x128xf32>
    %323 = vector.broadcast %322 : vector<1x128xf32> to vector<64x128xf32>
    %324 = arith.addf %321, %323 : vector<64x128xf32>
    %325 = vector.shape_cast %324 : vector<64x128xf32> to vector<8x8x128xf32>
    %c0_93 = arith.constant 0 : index
    %c0_94 = arith.constant 0 : index
    %c0_95 = arith.constant 0 : index
    %326 = vector.load %arg10[%c0_93, %c0_94, %c0_95] : memref<8x8x128xf32, #tpu.memory_space<vmem>>, vector<8x8x128xf32>
    tpu.vector_store %arg10[%c0_93, %c0_94, %c0_95], %325 {strides = array<i32>} : memref<8x8x128xf32, #tpu.memory_space<vmem>>, vector<8x8x128xf32>,
    %327 = arith.truncf %312 : vector<8x128xf32> to vector<8x128xbf16>
    %c0_96 = arith.constant 0 : index
    %c0_97 = arith.constant 0 : index
    %328 = vector.load %arg8[%c0_96, %c0_97] : memref<128x128xbf16, #tpu.memory_space<vmem>>, vector<128x128xbf16>
    %cst_98 = arith.constant dense<0.000000e+00> : vector<8x128xf32>
    %329 = tpu.matmul %327, %328, %cst_98 {dimension_numbers = #tpu.dot_dimension_numbers<[1], [0], [0], [1], [0, 0, 1, 1], [], []>} : vector<8x128xbf16>, vector<128x128xbf16>, vector<8x128xf32> -> vector<8x128xf32>
    %c0_99 = arith.constant 0 : index
    %c0_100 = arith.constant 0 : index
    %330 = vector.load %arg9[%c0_99, %c0_100] : memref<1x128xf32, #tpu.memory_space<vmem>>, vector<1x128xf32>
    %331 = vector.broadcast %330 : vector<1x128xf32> to vector<8x128xf32>
    %332 = arith.addf %329, %331 : vector<8x128xf32>
    %c0_101 = arith.constant 0 : index
    %c0_102 = arith.constant 0 : index
    %333 = vector.load %arg11[%c0_101, %c0_102] : memref<8x128xf32, #tpu.memory_space<vmem>>, vector<8x128xf32>
    tpu.vector_store %arg11[%c0_101, %c0_102], %332 {strides = array<i32>} : memref<8x128xf32, #tpu.memory_space<vmem>>, vector<8x128xf32>,
    return
  }
  func.func @transform_0(%arg0: i32) -> (i32, i32, i32) {
    %c0_i32 = arith.constant 0 : i32
    %c0_i32_0 = arith.constant 0 : i32
    %c0_i32_1 = arith.constant 0 : i32
    return %c0_i32, %arg0, %c0_i32_0 : i32, i32, i32
  }
  func.func @transform_1(%arg0: i32) -> (i32, i32, i32) {
    %c0_i32 = arith.constant 0 : i32
    %c0_i32_0 = arith.constant 0 : i32
    %c0_i32_1 = arith.constant 0 : i32
    return %c0_i32, %arg0, %c0_i32_0 : i32, i32, i32
  }
  func.func @transform_2(%arg0: i32) -> (i32, i32) {
    %c0_i32 = arith.constant 0 : i32
    %c0_i32_0 = arith.constant 0 : i32
    %c0_i32_1 = arith.constant 0 : i32
    return %c0_i32, %c0_i32_0 : i32, i32
  }
  func.func @transform_3(%arg0: i32) -> (i32, i32) {
    %c0_i32 = arith.constant 0 : i32
    %c0_i32_0 = arith.constant 0 : i32
    %c0_i32_1 = arith.constant 0 : i32
    return %c0_i32, %c0_i32_0 : i32, i32
  }
  func.func @transform_4(%arg0: i32) -> (i32, i32) {
    %c0_i32 = arith.constant 0 : i32
    %c0_i32_0 = arith.constant 0 : i32
    %c0_i32_1 = arith.constant 0 : i32
    return %c0_i32, %c0_i32_0 : i32, i32
  }
  func.func @transform_5(%arg0: i32) -> (i32, i32) {
    %c0_i32 = arith.constant 0 : i32
    %c0_i32_0 = arith.constant 0 : i32
    %c0_i32_1 = arith.constant 0 : i32
    return %c0_i32, %c0_i32_0 : i32, i32
  }
  func.func @transform_6(%arg0: i32) -> (i32, i32) {
    %c0_i32 = arith.constant 0 : i32
    %c0_i32_0 = arith.constant 0 : i32
    %c0_i32_1 = arith.constant 0 : i32
    return %c0_i32, %c0_i32_0 : i32, i32
  }
  func.func @transform_7(%arg0: i32) -> (i32, i32) {
    %c0_i32 = arith.constant 0 : i32
    %c0_i32_0 = arith.constant 0 : i32
    %c0_i32_1 = arith.constant 0 : i32
    return %c0_i32, %c0_i32_0 : i32, i32
  }
  func.func @transform_8(%arg0: i32) -> (i32, i32) {
    %c0_i32 = arith.constant 0 : i32
    %c0_i32_0 = arith.constant 0 : i32
    %c0_i32_1 = arith.constant 0 : i32
    return %c0_i32, %c0_i32_0 : i32, i32
  }
  func.func @transform_9(%arg0: i32) -> (i32, i32, i32) {
    %c0_i32 = arith.constant 0 : i32
    %c0_i32_0 = arith.constant 0 : i32
    %c0_i32_1 = arith.constant 0 : i32
    return %c0_i32, %arg0, %c0_i32_0 : i32, i32, i32
  }
  func.func @transform_10(%arg0: i32) -> (i32, i32) {
    %c0_i32 = arith.constant 0 : i32
    %c0_i32_0 = arith.constant 0 : i32
    return %arg0, %c0_i32 : i32, i32
  }
}

</mosaic_0001>

<bundles_post_ra>
// kernel: model_ias_forward.1
= control target key start
LH: loop header
LB: loop body
LE: loop exit
PB: predicated region body
PF: predicated region fallthrough
CT: control target
= control target key end

     0   :  { %v2281_v1 = vmov 0   ;;  %vm87_vm0 = vcmask 130048   ;;  %s3203_s2 = inlined_call_operand.vmem [shape: bf16[16,512], index: 2, kind: input, shape index: {}]   ;;  %s3204_s0 = inlined_call_operand.vmem [shape: bf16[8,8,16], index: 0, kind: input, shape index: {}]   ;;  %s3205_s3 = inlined_call_operand.vmem [shape: bf16[128,512], index: 3, kind: input, shape index: {}]   ;;  %s3206_s1 = inlined_call_operand.vmem [shape: f32[8,8,1], index: 1, kind: input, shape index: {}]   ;;  %s3207_s4 = inlined_call_operand.vmem [shape: f32[1,512], index: 4, kind: input, shape index: {}]   ;;  %s3208_s5 = inlined_call_operand.vmem [shape: bf16[128,128], index: 5, kind: input, shape index: {}]   ;;  %s3209_s7 = inlined_call_operand.vmem [shape: bf16[128,128], index: 7, kind: input, shape index: {}]   ;;  %s3210_s6 = inlined_call_operand.vmem [shape: f32[1,128], index: 6, kind: input, shape index: {}]   ;;  %s3211_s9 = inlined_call_operand.vmem [shape: f32[8,8,128], index: 9, kind: output, shape index: {0}]   ;;  %s3212_s8 = inlined_call_operand.vmem [shape: f32[1,128], index: 8, kind: input, shape index: {}]   ;;  %s3213_s10 = inlined_call_operand.vmem [shape: f32[8,128], index: 10, kind: output, shape index: {1}]  }
   0x1   :  { %v2047_v0 = vld [vmem:[%s3203_s2 + $0x4] ss:$16 sps:$4 sm:$0xff]   ;;  %132 = vmatprep.mubr.bf16.mxu0 %v2281_v1  ;;  %205 = vmatprep.mubr.bf16.mxu1 %v2281_v1  ;;  %v2049_v2 = vld [vmem:[%s3203_s2 + $0xc] ss:$16 sps:$4 sm:$0xff]   ;;  %v2051_v3 = vld [vmem:[%s3203_s2] ss:$16 sps:$4 sm:$0xff]  }
   0x2   :  { %2045 = vset.pattern.permute.xlu0 %v2281_v1  ;;  %2046 = vset.pattern.permute.xlu1 %v2281_v1  ;;  %v2052_v4 = vld [vmem:[%s3203_s2 + $0x8] ss:$16 sps:$4 sm:$0xff]   ;;  %v2053_v5 = vld [vmem:[%s3204_s0] sm:$0xff]   ;;  %v2366_v7 = vld [vmem:[%s3205_s3 + $0xc] ss:$16 sps:$4 sm:$0xff]  }
   0x3   :  { %100 = vmatprep.subr.bf16.mxu0 %v2047_v0  ;;  %173 = vmatprep.subr.bf16.mxu1 %v2049_v2  ;;  %v2361_v6 = vld [vmem:[%s3205_s3 + $0x4] ss:$16 sps:$4 sm:$0xff]   ;;  %v2371_v8 = vld [vmem:[%s3205_s3] ss:$16 sps:$4 sm:$0xff]   ;;  %v2377_v9 = vld [vmem:[%s3205_s3 + $0x8] ss:$16 sps:$4 sm:$0xff]  }
   0x4   :  { %101 = vmatpush1.bf16.msra.mxu0 %v2051_v3  ;;  %174 = vmatpush1.bf16.msra.mxu1 %v2052_v4  ;;  %v2384_v10 = vld [vmem:[%s3205_s3 + $0x24] ss:$16 sps:$4 sm:$0xff]   ;;  %v2391_v11 = vld [vmem:[%s3205_s3 + $0x2c] ss:$16 sps:$4 sm:$0xff]   ;;  %v2396_v12 = vld [vmem:[%s3205_s3 + $0x20] ss:$16 sps:$4 sm:$0xff]  }
   0x5   :  { %479 = vmatprep.subr.bf16.mxu0 %v2361_v6  ;;  %520 = vmatprep.subr.bf16.mxu1 %v2366_v7  ;;  %v2401_v13 = vld [vmem:[%s3205_s3 + $0x28] ss:$16 sps:$4 sm:$0xff]   ;;  %v2413_v15 = vld [vmem:[%s3205_s3 + $0x44] ss:$16 sps:$4 sm:$0xff]   ;;  %v2419_v16 = vld [vmem:[%s3205_s3 + $0x4c] ss:$16 sps:$4 sm:$0xff]  }
   0x6   :  { %v2066_v14 = vld [vmem:[%s3204_s0 + $0x8] sm:$0xff]   ;;  %v2425_v17 = vld [vmem:[%s3205_s3 + $0x40] ss:$16 sps:$4 sm:$0xff]   ;;  %v2437_v19 = vld [vmem:[%s3205_s3 + $0x64] ss:$16 sps:$4 sm:$0xff]  }
   0x7   :  { %1882 = vmatmul.mubr.msk.bf16.vlgmr.msra.gmra.mrb[0].mxu0 %vm87_vm0, %v2053_v5  ;;  %1886 = vmatmul.mubr.msk.bf16.vlgmr.msra.gmra.mrb[0].mxu1 %vm87_vm0, %v2053_v5  ;;  %v2430_v18 = vld [vmem:[%s3205_s3 + $0x48] ss:$16 sps:$4 sm:$0xff]   ;;  %v2443_v20 = vld [vmem:[%s3205_s3 + $0x6c] ss:$16 sps:$4 sm:$0xff]   ;;  %v2450_v21 = vld [vmem:[%s3205_s3 + $0x60] ss:$16 sps:$4 sm:$0xff]  }
   0x8   :  { %480 = vmatpush1.bf16.msra.mxu0 %v2371_v8  ;;  %521 = vmatpush1.bf16.msra.mxu1 %v2377_v9  ;;  %v2456_v22 = vld [vmem:[%s3205_s3 + $0x68] ss:$16 sps:$4 sm:$0xff]   ;;  %v2464_v23 = vld [vmem:[%s3205_s3 + $0x84] ss:$16 sps:$4 sm:$0xff]   ;;  %v2471_v24 = vld [vmem:[%s3205_s3 + $0x8c] ss:$16 sps:$4 sm:$0xff]  }
   0x9   :  { %481 = vmatprep.subr.bf16.mxu0 %v2384_v10  ;;  %522 = vmatprep.subr.bf16.mxu1 %v2391_v11  ;;  %v2079_v25 = vld [vmem:[%s3204_s0 + $0x10] sm:$0xff]   ;;  %v2487_v27 = vld [vmem:[%s3205_s3 + $0x88] ss:$16 sps:$4 sm:$0xff]   ;;  %v2498_v29 = vld [vmem:[%s3205_s3 + $0xac] ss:$16 sps:$4 sm:$0xff]  }
   0xa   :  { %142 = vmatprep.mubr.bf16.mxu0 %v2281_v1  ;;  %215 = vmatprep.mubr.bf16.mxu1 %v2281_v1  ;;  %v2480_v26 = vld [vmem:[%s3205_s3 + $0x80] ss:$16 sps:$4 sm:$0xff]   ;;  %v2492_v28 = vld [vmem:[%s3205_s3 + $0xa4] ss:$16 sps:$4 sm:$0xff]   ;;  %v2511_v31 = vld [vmem:[%s3205_s3 + $0xa8] ss:$16 sps:$4 sm:$0xff]  }
   0xb   :  { %v2506_v30 = vld [vmem:[%s3205_s3 + $0xa0] ss:$16 sps:$4 sm:$0xff]   ;;  %v2519_v32 = vld [vmem:[%s3205_s3 + $0xc4] ss:$16 sps:$4 sm:$0xff]   ;;  %v2526_v33 = vld [vmem:[%s3205_s3 + $0xcc] ss:$16 sps:$4 sm:$0xff]  }
   0xc   :  { %482 = vmatpush1.bf16.msra.mxu0 %v2396_v12  ;;  %523 = vmatpush1.bf16.msra.mxu1 %v2401_v13  ;;  %v2092_v34 = vld [vmem:[%s3204_s0 + $0x18] sm:$0xff]   ;;  %v2535_v35 = vld [vmem:[%s3205_s3 + $0xc0] ss:$16 sps:$4 sm:$0xff]   ;;  %v2550_v38 = vld [vmem:[%s3205_s3 + $0xe4] ss:$16 sps:$4 sm:$0xff]  }
   0xd   :  { %483 = vmatprep.subr.bf16.mxu0 %v2413_v15  ;;  %524 = vmatprep.subr.bf16.mxu1 %v2419_v16  ;;  %v610_v36 = vld [vmem:[%s3206_s1] sm:$0xff]  ;;  %v2545_v37 = vld [vmem:[%s3205_s3 + $0xc8] ss:$16 sps:$4 sm:$0xff]   ;;  %v2556_v39 = vld [vmem:[%s3205_s3 + $0xec] ss:$16 sps:$4 sm:$0xff]  }
   0xe   :  { %vm611_vm1 = vcmp.ne.f32.partialorder %v610_v36, 0.0  ;;  %v1934_v40 = vld [vmem:[%s3206_s1 + $0x8] sm:$0xff]  ;;  %v2567_v41 = vld [vmem:[%s3205_s3 + $0xe0] ss:$16 sps:$4 sm:$0xff]  }
   0xf   :  { %1883 = vmatmul.mubr.msk.bf16.gmra.mrb[4].mxu0 %vm87_vm0, %v2066_v14  ;;  %1887 = vmatmul.mubr.msk.bf16.gmra.mrb[4].mxu1 %vm87_vm0, %v2066_v14  ;;  %v612_v42 = vsel %vm611_vm1, 1, %v2281_v1  ;;  %v2576_v43 = vld [vmem:[%s3205_s3 + $0xe8] ss:$16 sps:$4 sm:$0xff]   ;;  %vm755_vm2 = vcmp.ne.f32.partialorder %v1934_v40, 0.0  ;;  %v1946_v44 = vld [vmem:[%s3206_s1 + $0x20] sm:$0xff]  ;;  %v1954_v46 = vld [vmem:[%s3206_s1 + $0x30] sm:$0xff] }
  0x10   :  { %484 = vmatpush1.bf16.msra.mxu0 %v2425_v17  ;;  %152 = vmatprep.mubr.bf16.mxu0 %v2281_v1  ;;  %v756_v45 = vsel %vm755_vm2, 1, %v2281_v1  ;;  %vm1169_vm3 = vcmp.ne.f32.partialorder %v1946_v44, 0.0  ;;  %vm1448_vm4 = vcmp.ne.f32.partialorder %v1954_v46, 0.0 }
  0x11   :  { %525 = vmatpush1.bf16.msra.mxu1 %v2430_v18  ;;  %485 = vmatprep.subr.bf16.mxu0 %v2437_v19  ;;  %v1170_v47 = vsel %vm1169_vm3, 1, %v2281_v1  ;;  %v1449_v48 = vsel %vm1448_vm4, 1, %v2281_v1 }
  0x12   :  { %526 = vmatprep.subr.bf16.mxu1 %v2443_v20  ;;  %225 = vmatprep.mubr.bf16.mxu1 %v2281_v1 }
  0x13   :  { %614 = vperm.xlu0 %2045, %v612_v42  }
  0x14   :  { %486 = vmatpush1.bf16.msra.mxu0 %v2450_v21 }
  0x15   :  { %527 = vmatpush1.bf16.msra.mxu1 %v2456_v22  ;;  %487 = vmatprep.subr.bf16.mxu0 %v2464_v23 }
  0x16   :  { %528 = vmatprep.subr.bf16.mxu1 %v2471_v24 }
  0x17   :  { %1884 = vmatmul.mubr.msk.bf16.gmra.mrb[8].mxu0 %vm87_vm0, %v2079_v25  ;;  %1888 = vmatmul.mubr.msk.bf16.gmra.mrb[8].mxu1 %vm87_vm0, %v2079_v25 }
  0x18   :  { %488 = vmatpush1.bf16.msra.mxu0 %v2480_v26  ;;  %162 = vmatprep.mubr.bf16.mxu0 %v2281_v1 }
  0x19   :  { %529 = vmatpush1.bf16.msra.mxu1 %v2487_v27  ;;  %489 = vmatprep.subr.bf16.mxu0 %v2492_v28 }
  0x1a   :  { %530 = vmatprep.subr.bf16.mxu1 %v2498_v29  ;;  %235 = vmatprep.mubr.bf16.mxu1 %v2281_v1 }
  0x1b   :  { %758 = vperm.xlu0 %2045, %v756_v45  }
  0x1c   :  { %490 = vmatpush1.bf16.msra.mxu0 %v2506_v30 }
  0x1d   :  { %531 = vmatpush1.bf16.msra.mxu1 %v2511_v31  ;;  %491 = vmatprep.subr.bf16.mxu0 %v2519_v32 }
  0x1e   :  { %532 = vmatprep.subr.bf16.mxu1 %v2526_v33 }
  0x1f   :  { %1885 = vmatmul.mubr.msk.bf16.gmra.mrb[12].mxu0 %vm87_vm0, %v2092_v34  ;;  %1889 = vmatmul.mubr.msk.bf16.gmra.mrb[12].mxu1 %vm87_vm0, %v2092_v34 }
  0x20   :  { %492 = vmatpush1.bf16.msra.mxu0 %v2535_v35  ;;  %511 = vmatprep.mubr.bf16.mxu0 %v2281_v1 }
  0x21   :  { %533 = vmatpush1.bf16.msra.mxu1 %v2545_v37  ;;  %493 = vmatprep.subr.bf16.mxu0 %v2550_v38 }
  0x22   :  { %534 = vmatprep.subr.bf16.mxu1 %v2556_v39  ;;  %552 = vmatprep.mubr.bf16.mxu1 %v2281_v1 }
  0x23   :  { %1172 = vperm.xlu0 %2045, %v1170_v47  }
  0x24   :  { %494 = vmatpush1.bf16.msra.mxu0 %v2567_v41 }
  0x25   :  { %535 = vmatpush1.bf16.msra.mxu1 %v2576_v43  ;;  %643 = vmatprep.subr.bf16.mxu0 %v2361_v6 }
  0x26   :  { %684 = vmatprep.subr.bf16.mxu1 %v2366_v7 }
  0x27   :  { %512 = vmatmul.mubr.bf16.vlgmr.msra.gmra.mrb[16].mxu0 %v2281_v1  ;;  %1451 = vperm.xlu0 %2045, %v1449_v48  }
  0x28   :  { %553 = vmatmul.mubr.bf16.vlgmr.msra.gmra.mrb[16].mxu1 %v2281_v1  ;;  %644 = vmatpush1.bf16.msra.mxu0 %v2371_v8 }
  0x29   :  { %685 = vmatpush1.bf16.msra.mxu1 %v2377_v9  ;;  %645 = vmatprep.subr.bf16.mxu0 %v2384_v10 }
  0x2a   :  { %686 = vmatprep.subr.bf16.mxu1 %v2391_v11  ;;  %675 = vmatprep.mubr.bf16.mxu0 %v2281_v1 }
  0x2b   :  { %716 = vmatprep.mubr.bf16.mxu1 %v2281_v1 }
  0x2c   :  { %646 = vmatpush1.bf16.msra.mxu0 %v2396_v12 }
  0x2d   :  { %687 = vmatpush1.bf16.msra.mxu1 %v2401_v13  ;;  %647 = vmatprep.subr.bf16.mxu0 %v2413_v15 }
  0x2e   :  { %688 = vmatprep.subr.bf16.mxu1 %v2419_v16 }
  0x30   :  { %648 = vmatpush1.bf16.msra.mxu0 %v2425_v17 }
  0x31   :  { %689 = vmatpush1.bf16.msra.mxu1 %v2430_v18  ;;  %649 = vmatprep.subr.bf16.mxu0 %v2437_v19 }
  0x32   :  { %690 = vmatprep.subr.bf16.mxu1 %v2443_v20 }
  0x34   :  { %650 = vmatpush1.bf16.msra.mxu0 %v2450_v21 }
  0x35   :  { %691 = vmatpush1.bf16.msra.mxu1 %v2456_v22  ;;  %651 = vmatprep.subr.bf16.mxu0 %v2464_v23 }
  0x36   :  { %692 = vmatprep.subr.bf16.mxu1 %v2471_v24 }
  0x38   :  { %652 = vmatpush1.bf16.msra.mxu0 %v2480_v26 }
  0x39   :  { %693 = vmatpush1.bf16.msra.mxu1 %v2487_v27  ;;  %653 = vmatprep.subr.bf16.mxu0 %v2492_v28 }
  0x3a   :  { %694 = vmatprep.subr.bf16.mxu1 %v2498_v29 }
  0x3c   :  { %654 = vmatpush1.bf16.msra.mxu0 %v2506_v30 }
  0x3d   :  { %695 = vmatpush1.bf16.msra.mxu1 %v2511_v31  ;;  %655 = vmatprep.subr.bf16.mxu0 %v2519_v32 }
  0x3e   :  { %696 = vmatprep.subr.bf16.mxu1 %v2526_v33 }
  0x40   :  { %656 = vmatpush1.bf16.msra.mxu0 %v2535_v35 }
  0x41   :  { %697 = vmatpush1.bf16.msra.mxu1 %v2545_v37  ;;  %657 = vmatprep.subr.bf16.mxu0 %v2550_v38 }
  0x42   :  { %698 = vmatprep.subr.bf16.mxu1 %v2556_v39 }
  0x44   :  { %658 = vmatpush1.bf16.msra.mxu0 %v2567_v41 }
  0x45   :  { %699 = vmatpush1.bf16.msra.mxu1 %v2576_v43  ;;  %778 = vmatprep.subr.bf16.mxu0 %v2361_v6 }
  0x46   :  { %819 = vmatprep.subr.bf16.mxu1 %v2366_v7 }
  0xda   :  { %v134_v49 = vpop.f32.mrb[0].mxu0  ;;  %v207_v50 = vpop.f32.mrb[0].mxu1 }
  0xdb   :  { %v136_v51 = vpop.f32.mrb[1].mxu0  ;;  %v209_v52 = vpop.f32.mrb[1].mxu1 }
  0xdc   :  { %v138_v53 = vpop.f32.mrb[2].mxu0  ;;  %v211_v54 = vpop.f32.mrb[2].mxu1 }
  0xdd   :  { %v246_v55 = vpack.c.bf16 %v138_v53, %v134_v49  ;;  %v140_v56 = vpop.f32.mrb[3].mxu0  ;;  %v248_v57 = vpack.c.bf16 %v211_v54, %v207_v50  ;;  %v213_v58 = vpop.f32.mrb[3].mxu1 }
  0xde   :  { %v247_v59 = vpack.c.bf16 %v140_v56, %v136_v51  ;;  %v249_v60 = vpack.c.bf16 %v213_v58, %v209_v52  ;;  %v562_v52 = vlaneseq }
  0xdf   :  { %262 = vst [vmem:[#allocation2] sm:$0xff] %v246_v55  ;;  %264 = vst [vmem:[#allocation2 + $0x10] sm:$0xff] %v248_v57 }
  0xe0   :  { %263 = vst [vmem:[#allocation2 + $0x8] sm:$0xff] %v247_v59  ;;  %265 = vst [vmem:[#allocation2 + $0x18] sm:$0xff] %v249_v60  ;;  %v563_v55 = vshrl.u32 %v562_v52, 7 }
  0xe2   :  { %v144_v61 = vpop.f32.mrb[4].mxu0  ;;  %v217_v62 = vpop.f32.mrb[4].mxu1 }
  0xe3   :  { %v146_v63 = vpop.f32.mrb[5].mxu0  ;;  %v219_v0 = vpop.f32.mrb[5].mxu1 }
  0xe4   :  { %v148_v2 = vpop.f32.mrb[6].mxu0  ;;  %v221_v3 = vpop.f32.mrb[6].mxu1 }
  0xe5   :  { %v250_v4 = vpack.c.bf16 %v148_v2, %v144_v61  ;;  %v150_v5 = vpop.f32.mrb[7].mxu0  ;;  %v252_v14 = vpack.c.bf16 %v221_v3, %v217_v62  ;;  %v223_v25 = vpop.f32.mrb[7].mxu1  ;;  %v564_v3 = vsub.s32 0, %v563_v55 }
  0xe6   :  { %v251_v34 = vpack.c.bf16 %v150_v5, %v146_v63  ;;  %v253_v36 = vpack.c.bf16 %v223_v25, %v219_v0  ;;  %v311_v25 = vld [vmem:[#allocation2] ss:$16 sps:$4 sm:$0xff]  }
  0xe7   :  { %266 = vst [vmem:[#allocation2 + $0x20] sm:$0xff] %v250_v4  ;;  %268 = vst [vmem:[#allocation2 + $0x30] sm:$0xff] %v252_v14  ;;  %v310_v14 = vld [vmem:[%s3207_s4] sm:$0xf] }
  0xe8   :  { %267 = vst [vmem:[#allocation2 + $0x28] sm:$0xff] %v251_v34  ;;  %269 = vst [vmem:[#allocation2 + $0x38] sm:$0xff] %v253_v36  ;;  %v568_v34 = vsub.s32 1, %v563_v55  ;;  %v312_v36 = vld [vmem:[#allocation2 + $0x8] ss:$16 sps:$4 sm:$0xff]  }
  0xea   :  { %v154_v40 = vpop.f32.mrb[8].mxu0  ;;  %v227_v42 = vpop.f32.mrb[8].mxu1 }
  0xeb   :  { %v156_v44 = vpop.f32.mrb[9].mxu0  ;;  %v229_v45 = vpop.f32.mrb[9].mxu1 }
  0xec   :  { %v158_v46 = vpop.f32.mrb[10].mxu0  ;;  %v231_v47 = vpop.f32.mrb[10].mxu1 }
  0xed   :  { %v254_v48 = vpack.c.bf16 %v158_v46, %v154_v40  ;;  %v160_v49 = vpop.f32.mrb[11].mxu0  ;;  %v256_v50 = vpack.c.bf16 %v231_v47, %v227_v42  ;;  %v233_v51 = vpop.f32.mrb[11].mxu1  ;;  %v315_v40 = vunpack.c.l.bf16 %v311_v25  ;;  %v2632_v42 = vrot.slane %v310_v14, %v564_v3 }
  0xee   :  { %v255_v53 = vpack.c.bf16 %v160_v49, %v156_v44  ;;  %v257_v54 = vpack.c.bf16 %v233_v51, %v229_v45  ;;  %v316_v45 = vunpack.c.l.bf16 %v312_v36  ;;  %v2634_v46 = vrot.slane %v310_v14, %v568_v34 }
  0xef   :  { %270 = vst [vmem:[#allocation2 + $0x40] sm:$0xff] %v254_v48  ;;  %272 = vst [vmem:[#allocation2 + $0x50] sm:$0xff] %v256_v50  ;;  %v572_v50 = vsub.s32 2, %v563_v55  ;;  %v318_v3 = vunpack.c.h.bf16 %v312_v36 }
  0xf0   :  { %271 = vst [vmem:[#allocation2 + $0x48] sm:$0xff] %v255_v53  ;;  %273 = vst [vmem:[#allocation2 + $0x58] sm:$0xff] %v257_v54 }
  0xf2   :  { %v164_v56 = vpop.f32.mrb[12].mxu0  ;;  %v237_v57 = vpop.f32.mrb[12].mxu1 }
  0xf3   :  { %v166_v58 = vpop.f32.mrb[13].mxu0  ;;  %v239_v59 = vpop.f32.mrb[13].mxu1 }
  0xf4   :  { %v168_v60 = vpop.f32.mrb[14].mxu0  ;;  %v241_v61 = vpop.f32.mrb[14].mxu1 }
  0xf5   :  { %v258_v62 = vpack.c.bf16 %v168_v60, %v164_v56  ;;  %v170_v63 = vpop.f32.mrb[15].mxu0  ;;  %v260_v0 = vpack.c.bf16 %v241_v61, %v237_v57  ;;  %v243_v2 = vpop.f32.mrb[15].mxu1 }
  0xf6   :  { %v259_v4 = vpack.c.bf16 %v170_v63, %v166_v58  ;;  %v261_v5 = vpack.c.bf16 %v243_v2, %v239_v59  ;;  %v317_v58 = vunpack.c.h.bf16 %v311_v25  ;;  %v2638_v63 = vrot.slane %v310_v14, %v572_v50 }
  0xf7   :  { %274 = vst [vmem:[#allocation2 + $0x60] sm:$0xff] %v258_v62  ;;  %276 = vst [vmem:[#allocation2 + $0x70] sm:$0xff] %v260_v0  ;;  %v576_v2 = vsub.s32 3, %v563_v55 }
  0xf8   :  { %275 = vst [vmem:[#allocation2 + $0x68] sm:$0xff] %v259_v4  ;;  %277 = vst [vmem:[#allocation2 + $0x78] sm:$0xff] %v261_v5 }
  0xf9   :  { %v2641_v34 = vrot.slane %v310_v14, %v576_v2  ;;  %v1942_v2 = vld [vmem:[%s3206_s1 + $0x18] sm:$0xff] }
  0xfa   :  { %v513_v44 = vpop.f32.mrb[16].mxu0  ;;  %vm1034_vm8 = vcmp.ne.f32.partialorder %v1942_v2, 0.0 }
  0xfb   :  { %v514_v47 = vadd.f32 %v513_v44, %v315_v40  ;;  %v554_v48 = vpop.f32.mrb[16].mxu1  ;;  %v515_v49 = vpop.f32.mrb[17].mxu0 }
  0xfc   :  { %v516_v51 = vadd.f32 %v515_v49, %v316_v45  ;;  %v556_v52 = vpop.f32.mrb[17].mxu1  ;;  %v517_v53 = vpop.f32.mrb[18].mxu0  ;;  %v555_v62 = vadd.f32 %v554_v48, %v317_v58 }
  0xfd   :  { %v582_v54 = vadd.f32 %v2632_v42, %v514_v47  ;;  %v518_v56 = vpop.f32.mrb[19].mxu0  ;;  %v558_v57 = vpop.f32.mrb[18].mxu1  ;;  %v557_v5 = vadd.f32 %v556_v52, %v318_v3 }
  0xfe   :  { %v583_v59 = vadd.f32 %v2634_v46, %v516_v51  ;;  %v559_v60 = vpop.f32.mrb[19].mxu1  ;;  %v584_v4 = vadd.f32 %v2638_v63, %v555_v62 }
  0xff   :  { %v1922_v61 = vmul.f32 -1.442695, %v582_v54  ;;  %v585_v25 = vadd.f32 %v2641_v34, %v557_v5  ;;  %v2647_v54 = vpop.permute.xlu0 %614  ;;  %v1035_v5 = vsel %vm1034_vm8, 1, %v2281_v1 }
 0x100   :  { %v1923_v0 = vmul.f32 -1.442695, %v583_v59  ;;  %v1924_v40 = vmul.f32 -1.442695, %v584_v4  ;;  %vm616_vm5 = vcmp.eq.s32.totalorder %v2647_v54, 1  ;;  %v1950_v4 = vld [vmem:[%s3206_s1 + $0x28] sm:$0xff] }
 0x101   :  { %2121 = vpow2.f32 %v1922_v61  ;;  %vm620_vm6 = vmpackc.low %vm616_vm5, %vm616_vm5  ;;  %vm1313_vm9 = vcmp.ne.f32.partialorder %v1950_v4, 0.0 }
 0x102   :  { %2123 = vpow2.f32 %v1923_v0  ;;  %v1938_v0 = vld [vmem:[%s3206_s1 + $0x10] sm:$0xff] }
 0x103   :  { %2125 = vpow2.f32 %v1924_v40  ;;  %vm890_vm7 = vcmp.ne.f32.partialorder %v1938_v0, 0.0  ;;  %v1958_v40 = vld [vmem:[%s3206_s1 + $0x38] sm:$0xff] }
 0x104   :  { %2127 = vtanh.f32 %v585_v25  ;;  %v891_v3 = vsel %vm890_vm7, 1, %v2281_v1  ;;  %v1314_v25 = vsel %vm1313_vm9, 1, %v2281_v1  ;;  %vm1592_vm10 = vcmp.ne.f32.partialorder %v1958_v40, 0.0 }
 0x105   :  { %893 = vperm.xlu1 %2046, %v891_v3   ;;  %vm2283_vm7 = vmmov 0  }
 0x109   :  { %1037 = vperm.xlu1 %2046, %v1035_v5  }
 0x10b   :  { %v2122_v44 = vpop.eup %2121 }
 0x10c   :  { %v595_v45 = vadd.f32 1.0, %v2122_v44  ;;  %v2124_v47 = vpop.eup %2123  ;;  %v1593_v44 = vsel %vm1592_vm10, 1, %v2281_v1 }
 0x10d   :  { %v596_v48 = vadd.f32 1.0, %v2124_v47  ;;  %v2126_v49 = vpop.eup %2125  ;;  %1316 = vperm.xlu1 %2046, %v1314_v25   ;;  %v624_v47 = vld [vmem:[#allocation2 + $0x8] sm:$0xf0] }
 0x10e   :  { %2129 = vrcp.f32 %v595_v45  ;;  %v2128_v55 = vpop.eup %2127  ;;  %v597_v53 = vadd.f32 1.0, %v2126_v49  ;;  %v623_v45 = vld [vmem:[#allocation2] sm:$0xf0]  ;;  %v632_v49 = vrot.slane %v624_v47, 4 }
 0x10f   :  { %2131 = vrcp.f32 %v596_v48  ;;  %v631_v48 = vrot.slane %v623_v45, 4 }
 0x110   :  { %2133 = vrcp.f32 %v597_v53  ;;  %v640_v53 = vunpack.c.l.bf16 %v632_v49 }
 0x111   :  { %1595 = vperm.xlu1 %2046, %v1593_v44  }
 0x118   :  { %v2130_v50 = vpop.eup %2129 }
 0x119   :  { %v606_v36 = vmul.f32 %v2130_v50, %v2128_v55  ;;  %v2132_v51 = vpop.eup %2131  ;;  %v625_v55 = vld [vmem:[#allocation2 + $0x10] sm:$0xf0]  ;;  %v639_v50 = vunpack.c.l.bf16 %v631_v48 }
 0x11a   :  { %v605_v52 = vmul.f32 0.0, %v2132_v51  ;;  %v2134_v56 = vpop.eup %2133 }
 0x11c   :  { %v2644_v14 = vadd.f32 %v606_v36, %v605_v52 }
 0x11e   :  { %2135 = vtanh.f32 %v2644_v14 }
 0x128   :  { %v2136_v57 = vpop.eup %2135 }
 0x129   :  { %v609_v58 = vmul.f32 %v2136_v57, %v2134_v56  ;;  %v633_v56 = vrot.slane %v625_v55, 4 }
 0x12b   :  { %v2655_v59 = vsel %vm616_vm5, %v609_v58, 0.0  ;;  %v1926_v60 = vpack.c.bf16 %v609_v58, %v609_v58  ;;  %v626_v58 = vld [vmem:[#allocation2 + $0x18] sm:$0xf0]  ;;  %v641_v44 = vunpack.c.l.bf16 %v633_v56 }
 0x12c   :  { %v619_v61 = vpack.c.bf16 %v2655_v59, %v2655_v59  ;;  %v634_v40 = vrot.slane %v626_v58, 4 }
 0x12d   :  { %1927 = vmatmul.mubr.msk.bf16.vlgmr.msra.gmra.mrb[20].mxu0 %vm620_vm6, %v1926_v60  ;;  %1930 = vmatmul.mubr.msk.bf16.vlgmr.msra.gmra.mrb[20].mxu1 %vm620_vm6, %v1926_v60 }
 0x12e   :  { %v621_v62 = vsel %vm620_vm6, %v619_v61, 0  ;;  %779 = vmatpush1.bf16.msra.mxu0 %v2371_v8  ;;  %820 = vmatpush1.bf16.msra.mxu1 %v2377_v9  ;;  %v642_v48 = vunpack.c.l.bf16 %v634_v40 }
 0x12f   :  { %622 = vst [vmem:[#allocation3] sm:$0xf] %v621_v62  ;;  %780 = vmatprep.subr.bf16.mxu0 %v2384_v10  ;;  %821 = vmatprep.subr.bf16.mxu1 %v2391_v11 }
 0x130   :  { %810 = vmatprep.mubr.bf16.mxu0 %v2281_v1  ;;  %851 = vmatprep.mubr.bf16.mxu1 %v2281_v1 }
 0x132   :  { %781 = vmatpush1.bf16.msra.mxu0 %v2396_v12  ;;  %822 = vmatpush1.bf16.msra.mxu1 %v2401_v13 }
 0x133   :  { %782 = vmatprep.subr.bf16.mxu0 %v2413_v15  ;;  %823 = vmatprep.subr.bf16.mxu1 %v2419_v16 }
 0x136   :  { %783 = vmatpush1.bf16.msra.mxu0 %v2425_v17  ;;  %824 = vmatpush1.bf16.msra.mxu1 %v2430_v18 }
 0x137   :  { %784 = vmatprep.subr.bf16.mxu0 %v2437_v19  ;;  %825 = vmatprep.subr.bf16.mxu1 %v2443_v20 }
 0x13a   :  { %785 = vmatpush1.bf16.msra.mxu0 %v2450_v21  ;;  %826 = vmatpush1.bf16.msra.mxu1 %v2456_v22 }
 0x13b   :  { %786 = vmatprep.subr.bf16.mxu0 %v2464_v23  ;;  %827 = vmatprep.subr.bf16.mxu1 %v2471_v24 }
 0x13e   :  { %787 = vmatpush1.bf16.msra.mxu0 %v2480_v26  ;;  %828 = vmatpush1.bf16.msra.mxu1 %v2487_v27 }
 0x13f   :  { %788 = vmatprep.subr.bf16.mxu0 %v2492_v28  ;;  %829 = vmatprep.subr.bf16.mxu1 %v2498_v29 }
 0x142   :  { %789 = vmatpush1.bf16.msra.mxu0 %v2506_v30  ;;  %830 = vmatpush1.bf16.msra.mxu1 %v2511_v31 }
 0x143   :  { %790 = vmatprep.subr.bf16.mxu0 %v2519_v32  ;;  %831 = vmatprep.subr.bf16.mxu1 %v2526_v33 }
 0x146   :  { %791 = vmatpush1.bf16.msra.mxu0 %v2535_v35  ;;  %832 = vmatpush1.bf16.msra.mxu1 %v2545_v37 }
 0x147   :  { %792 = vmatprep.subr.bf16.mxu0 %v2550_v38  ;;  %833 = vmatprep.subr.bf16.mxu1 %v2556_v39 }
 0x14a   :  { %793 = vmatpush1.bf16.msra.mxu0 %v2567_v41  ;;  %834 = vmatpush1.bf16.msra.mxu1 %v2576_v43 }
 0x14b   :  { %922 = vmatprep.subr.bf16.mxu0 %v2361_v6  ;;  %963 = vmatprep.subr.bf16.mxu1 %v2366_v7 }
 0x200   :  { %v677_v36 = vpop.f32.mrb[20].mxu0  ;;  %v718_v51 = vpop.f32.mrb[20].mxu1 }
 0x201   :  { %v678_v52 = vadd.f32 %v677_v36, %v639_v50  ;;  %v679_v57 = vpop.f32.mrb[21].mxu0  ;;  %v720_v60 = vpop.f32.mrb[21].mxu1  ;;  %v719_v47 = vadd.f32 %v718_v51, %v641_v44 }
 0x202   :  { %v680_v61 = vadd.f32 %v679_v57, %v640_v53  ;;  %v681_v62 = vpop.f32.mrb[22].mxu0  ;;  %v722_v0 = vpop.f32.mrb[22].mxu1  ;;  %v721_v49 = vadd.f32 %v720_v60, %v642_v48  ;;  %v618_v60 = vsel %vm616_vm5, %v2644_v14, 0.0 }
 0x203   :  { %v725_v2 = vadd.f32 %v678_v52, %v2632_v42  ;;  %v682_v3 = vpop.f32.mrb[23].mxu0  ;;  %v723_v4 = vpop.f32.mrb[23].mxu1  ;;  %v727_v55 = vadd.f32 %v719_v47, %v2638_v63 }
 0x204   :  { %v726_v5 = vadd.f32 %v680_v61, %v2634_v46  ;;  %v728_v50 = vadd.f32 %v721_v49, %v2641_v34  ;;  %v759_v4 = vpop.permute.xlu0 %758 }
 0x205   :  { %v1931_v25 = vmul.f32 -1.442695, %v725_v2  ;;  %v1933_v36 = vmul.f32 -1.442695, %v727_v55  ;;  %vm760_vm11 = vcmp.eq.s32.totalorder %v759_v4, 1 }
 0x206   :  { %v1932_v45 = vmul.f32 -1.442695, %v726_v5  ;;  %vm764_vm12 = vmpackc.low %vm760_vm11, %vm760_vm11 }
 0x207   :  { %2137 = vpow2.f32 %v1931_v25 }
 0x208   :  { %2139 = vpow2.f32 %v1932_v45 }
 0x209   :  { %2141 = vtanh.f32 %v728_v50 }
 0x20a   :  { %2143 = vpow2.f32 %v1933_v36 }
 0x211   :  { %v2138_v53 = vpop.eup %2137 }
 0x212   :  { %v738_v52 = vadd.f32 1.0, %v2138_v53  ;;  %v2140_v57 = vpop.eup %2139 }
 0x213   :  { %v739_v58 = vadd.f32 1.0, %v2140_v57  ;;  %v2142_v56 = vpop.eup %2141 }
 0x214   :  { %2145 = vrcp.f32 %v738_v52  ;;  %v2144_v61 = vpop.eup %2143 }
 0x215   :  { %2147 = vrcp.f32 %v739_v58  ;;  %v740_v2 = vadd.f32 1.0, %v2144_v61 }
 0x217   :  { %2149 = vrcp.f32 %v740_v2 }
 0x21e   :  { %v2146_v62 = vpop.eup %2145 }
 0x21f   :  { %v749_v51 = vmul.f32 %v2146_v62, %v2142_v56  ;;  %v2148_v0 = vpop.eup %2147 }
 0x220   :  { %v748_v3 = vmul.f32 %v2148_v0, %v618_v60 }
 0x221   :  { %v2150_v25 = vpop.eup %2149 }
 0x222   :  { %v750_v5 = vadd.f32 %v749_v51, %v748_v3 }
 0x224   :  { %2151 = vtanh.f32 %v750_v5  ;;  %v2716_v40 = vsel %vm760_vm11, %v750_v5, %v618_v60 }
 0x22e   :  { %v2152_v44 = vpop.eup %2151 }
 0x22f   :  { %v752_v45 = vmul.f32 %v2152_v44, %v2150_v25 }
 0x231   :  { %v2719_v47 = vsel %vm760_vm11, %v752_v45, %v2655_v59  ;;  %v771_v59 = vld [vmem:[#allocation2 + $0x28] ss:$16 sps:$4 sm:$0xff]  }
 0x232   :  { %v763_v48 = vpack.c.bf16 %v2719_v47, %v2719_v47  ;;  %v775_v36 = vunpack.c.l.bf16 %v771_v59  ;;  %v777_v4 = vunpack.c.h.bf16 %v771_v59 }
 0x234   :  { %v765_v14 = vsel %vm764_vm12, %v763_v48, 0  ;;  %811 = vmatmul.mubr.bf16.vlgmr.msra.gmra.mrb[24].mxu0 %v763_v48  ;;  %852 = vmatmul.mubr.bf16.vlgmr.msra.gmra.mrb[24].mxu1 %v763_v48 }
 0x235   :  { %v767_v54 = vrot.slane %v765_v14, 4  ;;  %923 = vmatpush1.bf16.msra.mxu0 %v2371_v8  ;;  %964 = vmatpush1.bf16.msra.mxu1 %v2377_v9  ;;  %v770_v8 = vld [vmem:[#allocation2 + $0x20] ss:$16 sps:$4 sm:$0xff]  }
 0x236   :  { %924 = vmatprep.subr.bf16.mxu0 %v2384_v10  ;;  %965 = vmatprep.subr.bf16.mxu1 %v2391_v11  ;;  %v774_v49 = vunpack.c.l.bf16 %v770_v8 }
 0x237   :  { %769 = vst [vmem:[#allocation3] sm:$0xf0] %v767_v54  ;;  %954 = vmatprep.mubr.bf16.mxu0 %v2281_v1  ;;  %995 = vmatprep.mubr.bf16.mxu1 %v2281_v1 }
 0x239   :  { %925 = vmatpush1.bf16.msra.mxu0 %v2396_v12  ;;  %966 = vmatpush1.bf16.msra.mxu1 %v2401_v13 }
 0x23a   :  { %926 = vmatprep.subr.bf16.mxu0 %v2413_v15  ;;  %967 = vmatprep.subr.bf16.mxu1 %v2419_v16 }
 0x23d   :  { %927 = vmatpush1.bf16.msra.mxu0 %v2425_v17  ;;  %968 = vmatpush1.bf16.msra.mxu1 %v2430_v18 }
 0x23e   :  { %928 = vmatprep.subr.bf16.mxu0 %v2437_v19  ;;  %969 = vmatprep.subr.bf16.mxu1 %v2443_v20 }
 0x241   :  { %929 = vmatpush1.bf16.msra.mxu0 %v2450_v21  ;;  %970 = vmatpush1.bf16.msra.mxu1 %v2456_v22 }
 0x242   :  { %930 = vmatprep.subr.bf16.mxu0 %v2464_v23  ;;  %971 = vmatprep.subr.bf16.mxu1 %v2471_v24 }
 0x245   :  { %931 = vmatpush1.bf16.msra.mxu0 %v2480_v26  ;;  %972 = vmatpush1.bf16.msra.mxu1 %v2487_v27 }
 0x246   :  { %932 = vmatprep.subr.bf16.mxu0 %v2492_v28  ;;  %973 = vmatprep.subr.bf16.mxu1 %v2498_v29 }
 0x249   :  { %933 = vmatpush1.bf16.msra.mxu0 %v2506_v30  ;;  %974 = vmatpush1.bf16.msra.mxu1 %v2511_v31 }
 0x24a   :  { %934 = vmatprep.subr.bf16.mxu0 %v2519_v32  ;;  %975 = vmatprep.subr.bf16.mxu1 %v2526_v33 }
 0x24d   :  { %935 = vmatpush1.bf16.msra.mxu0 %v2535_v35  ;;  %976 = vmatpush1.bf16.msra.mxu1 %v2545_v37 }
 0x24e   :  { %936 = vmatprep.subr.bf16.mxu0 %v2550_v38  ;;  %977 = vmatprep.subr.bf16.mxu1 %v2556_v39 }
 0x251   :  { %937 = vmatpush1.bf16.msra.mxu0 %v2567_v41  ;;  %978 = vmatpush1.bf16.msra.mxu1 %v2576_v43 }
 0x252   :  { %1057 = vmatprep.subr.bf16.mxu0 %v2361_v6  ;;  %1098 = vmatprep.subr.bf16.mxu1 %v2366_v7  ;;  %v776_v7 = vunpack.c.h.bf16 %v770_v8 }
 0x307   :  { %v812_v55 = vpop.f32.mrb[24].mxu0  ;;  %v853_v50 = vpop.f32.mrb[24].mxu1 }
 0x308   :  { %v813_v53 = vadd.f32 %v812_v55, %v774_v49  ;;  %v814_v52 = vpop.f32.mrb[25].mxu0  ;;  %v855_v57 = vpop.f32.mrb[25].mxu1  ;;  %v854_v3 = vadd.f32 %v853_v50, %v776_v7  ;;  %v2773_v7 = vld [vmem:[%s3205_s3] ss:$16 sps:$4 sm:$0xff]  }
 0x309   :  { %v815_v58 = vadd.f32 %v814_v52, %v775_v36  ;;  %v816_v56 = vpop.f32.mrb[26].mxu0  ;;  %v857_v61 = vpop.f32.mrb[26].mxu1  ;;  %v856_v5 = vadd.f32 %v855_v57, %v777_v4 }
 0x30a   :  { %v860_v62 = vadd.f32 %v813_v53, %v2632_v42  ;;  %v817_v51 = vpop.f32.mrb[27].mxu0  ;;  %v858_v0 = vpop.f32.mrb[27].mxu1  ;;  %v862_v25 = vadd.f32 %v854_v3, %v2638_v63 }
 0x30b   :  { %v861_v6 = vadd.f32 %v815_v58, %v2634_v46  ;;  %v863_v44 = vadd.f32 %v856_v5, %v2641_v34  ;;  %v894_v50 = vpop.permute.xlu1 %893 }
 0x30c   :  { %v1935_v60 = vmul.f32 -1.442695, %v860_v62  ;;  %v1937_v45 = vmul.f32 -1.442695, %v862_v25  ;;  %vm895_vm13 = vcmp.eq.s32.totalorder %v894_v50, 1 }
 0x30d   :  { %v1936_v2 = vmul.f32 -1.442695, %v861_v6  ;;  %vm899_vm14 = vmpackc.low %vm895_vm13, %vm895_vm13 }
 0x30e   :  { %2153 = vpow2.f32 %v1935_v60 }
 0x30f   :  { %2155 = vpow2.f32 %v1936_v2 }
 0x310   :  { %2157 = vtanh.f32 %v863_v44 }
 0x311   :  { %2159 = vpow2.f32 %v1937_v45 }
 0x318   :  { %v2154_v48 = vpop.eup %2153 }
 0x319   :  { %v873_v14 = vadd.f32 1.0, %v2154_v48  ;;  %v2156_v54 = vpop.eup %2155 }
 0x31a   :  { %v874_v49 = vadd.f32 1.0, %v2156_v54  ;;  %v2158_v8 = vpop.eup %2157 }
 0x31b   :  { %2161 = vrcp.f32 %v873_v14  ;;  %v2160_v55 = vpop.eup %2159 }
 0x31c   :  { %2163 = vrcp.f32 %v874_v49  ;;  %v875_v52 = vadd.f32 1.0, %v2160_v55 }
 0x31e   :  { %2165 = vrcp.f32 %v875_v52 }
 0x325   :  { %v2162_v36 = vpop.eup %2161 }
 0x326   :  { %v884_v59 = vmul.f32 %v2162_v36, %v2158_v8  ;;  %v2164_v53 = vpop.eup %2163  ;;  %v1038_v36 = vpop.permute.xlu1 %1037 }
 0x327   :  { %v883_v57 = vmul.f32 %v2164_v53, %v2716_v40  ;;  %vm1039_vm15 = vcmp.eq.s32.totalorder %v1038_v36, 1 }
 0x328   :  { %v2166_v61 = vpop.eup %2165  ;;  %vm1043_vm0 = vmpackc.low %vm1039_vm15, %vm1039_vm15 }
 0x329   :  { %v885_v58 = vadd.f32 %v884_v59, %v883_v57 }
 0x32b   :  { %2167 = vtanh.f32 %v885_v58  ;;  %v2763_v56 = vsel %vm895_vm13, %v885_v58, %v2716_v40 }
 0x335   :  { %v2168_v62 = vpop.eup %2167 }
 0x336   :  { %v887_v51 = vmul.f32 %v2168_v62, %v2166_v61 }
 0x338   :  { %v2766_v0 = vsel %vm895_vm13, %v887_v51, %v2719_v47 }
 0x339   :  { %v898_v6 = vpack.c.bf16 %v2766_v0, %v2766_v0 }
 0x33b   :  { %v900_v60 = vsel %vm899_vm14, %v898_v6, 0  ;;  %955 = vmatmul.mubr.bf16.vlgmr.msra.gmra.mrb[28].mxu0 %v898_v6  ;;  %996 = vmatmul.mubr.bf16.vlgmr.msra.gmra.mrb[28].mxu1 %v898_v6  ;;  %v2848_v6 = vld [vmem:[%s3205_s3 + $0x2c] ss:$16 sps:$4 sm:$0xff]  }
 0x33c   :  { %901 = vst [vmem:[#allocation3 + $0x8] sm:$0xf] %v900_v60  ;;  %1058 = vmatpush1.bf16.msra.mxu0 %v2773_v7  ;;  %1099 = vmatpush1.bf16.msra.mxu1 %v2377_v9  ;;  %v2810_v9 = vld [vmem:[%s3205_s3 + $0x4] ss:$16 sps:$4 sm:$0xff]   ;;  %v2856_v60 = vld [vmem:[%s3205_s3 + $0x20] ss:$16 sps:$4 sm:$0xff]  }
 0x33d   :  { %1059 = vmatprep.subr.bf16.mxu0 %v2384_v10  ;;  %1100 = vmatprep.subr.bf16.mxu1 %v2391_v11  ;;  %v2816_v10 = vld [vmem:[%s3205_s3 + $0xc] ss:$16 sps:$4 sm:$0xff]   ;;  %v902_v11 = vld [vmem:[#allocation2 + $0x20] sm:$0xf0] }
 0x33e   :  { %1089 = vmatprep.mubr.bf16.mxu0 %v2281_v1  ;;  %1130 = vmatprep.mubr.bf16.mxu1 %v2281_v1 }
 0x340   :  { %1060 = vmatpush1.bf16.msra.mxu0 %v2396_v12  ;;  %1101 = vmatpush1.bf16.msra.mxu1 %v2401_v13  ;;  %v903_v12 = vld [vmem:[#allocation2 + $0x28] sm:$0xf0]  ;;  %v910_v13 = vrot.slane %v902_v11, 4  ;;  %v2862_v11 = vld [vmem:[%s3205_s3 + $0x28] ss:$16 sps:$4 sm:$0xff]  }
 0x341   :  { %1061 = vmatprep.subr.bf16.mxu0 %v2413_v15  ;;  %1102 = vmatprep.subr.bf16.mxu1 %v2419_v16  ;;  %v911_v15 = vrot.slane %v903_v12, 4  ;;  %v904_v16 = vld [vmem:[#allocation2 + $0x30] sm:$0xf0] }
 0x342   :  { %v2868_v12 = vld [vmem:[%s3205_s3 + $0x44] ss:$16 sps:$4 sm:$0xff]  }
 0x344   :  { %1062 = vmatpush1.bf16.msra.mxu0 %v2425_v17  ;;  %1103 = vmatpush1.bf16.msra.mxu1 %v2430_v18  ;;  %v918_v17 = vunpack.c.l.bf16 %v910_v13  ;;  %v2874_v13 = vld [vmem:[%s3205_s3 + $0x4c] ss:$16 sps:$4 sm:$0xff]  }
 0x345   :  { %1063 = vmatprep.subr.bf16.mxu0 %v2437_v19  ;;  %1104 = vmatprep.subr.bf16.mxu1 %v2443_v20  ;;  %v919_v20 = vunpack.c.l.bf16 %v911_v15  ;;  %v2880_v15 = vld [vmem:[%s3205_s3 + $0x40] ss:$16 sps:$4 sm:$0xff]  }
 0x348   :  { %1064 = vmatpush1.bf16.msra.mxu0 %v2450_v21  ;;  %1105 = vmatpush1.bf16.msra.mxu1 %v2456_v22  ;;  %v912_v22 = vrot.slane %v904_v16, 4  ;;  %v2886_v16 = vld [vmem:[%s3205_s3 + $0x48] ss:$16 sps:$4 sm:$0xff]  }
 0x349   :  { %1065 = vmatprep.subr.bf16.mxu0 %v2464_v23  ;;  %1106 = vmatprep.subr.bf16.mxu1 %v2471_v24  ;;  %v905_v24 = vld [vmem:[#allocation2 + $0x38] sm:$0xf0] }
 0x34c   :  { %1066 = vmatpush1.bf16.msra.mxu0 %v2480_v26  ;;  %1107 = vmatpush1.bf16.msra.mxu1 %v2487_v27 }
 0x34d   :  { %1067 = vmatprep.subr.bf16.mxu0 %v2492_v28  ;;  %1108 = vmatprep.subr.bf16.mxu1 %v2498_v29 }
 0x350   :  { %1068 = vmatpush1.bf16.msra.mxu0 %v2506_v30  ;;  %1109 = vmatpush1.bf16.msra.mxu1 %v2511_v31 }
 0x351   :  { %1069 = vmatprep.subr.bf16.mxu0 %v2519_v32  ;;  %1110 = vmatprep.subr.bf16.mxu1 %v2526_v33 }
 0x354   :  { %1070 = vmatpush1.bf16.msra.mxu0 %v2535_v35  ;;  %1111 = vmatpush1.bf16.msra.mxu1 %v2545_v37  ;;  %v913_v35 = vrot.slane %v905_v24, 4  ;;  %v2934_v24 = vld [vmem:[%s3205_s3 + $0x88] ss:$16 sps:$4 sm:$0xff]  }
 0x355   :  { %1071 = vmatprep.subr.bf16.mxu0 %v2550_v38  ;;  %1112 = vmatprep.subr.bf16.mxu1 %v2556_v39  ;;  %v920_v38 = vunpack.c.l.bf16 %v912_v22  ;;  %v2922_v22 = vld [vmem:[%s3205_s3 + $0x8c] ss:$16 sps:$4 sm:$0xff]  }
 0x358   :  { %1072 = vmatpush1.bf16.msra.mxu0 %v2567_v41  ;;  %1113 = vmatpush1.bf16.msra.mxu1 %v2576_v43  ;;  %v921_v43 = vunpack.c.l.bf16 %v913_v35  ;;  %v2988_v35 = vld [vmem:[%s3205_s3 + $0xe4] ss:$16 sps:$4 sm:$0xff]  }
 0x359   :  { %1201 = vmatprep.subr.bf16.mxu0 %v2810_v9  ;;  %1242 = vmatprep.subr.bf16.mxu1 %v2816_v10 }
 0x40e   :  { %v956_v18 = vpop.f32.mrb[28].mxu0  ;;  %v997_v19 = vpop.f32.mrb[28].mxu1 }
 0x40f   :  { %v957_v21 = vadd.f32 %v956_v18, %v918_v17  ;;  %v958_v23 = vpop.f32.mrb[29].mxu0  ;;  %v999_v26 = vpop.f32.mrb[29].mxu1  ;;  %v998_v41 = vadd.f32 %v997_v19, %v920_v38  ;;  %v2892_v17 = vld [vmem:[%s3205_s3 + $0x64] ss:$16 sps:$4 sm:$0xff]   ;;  %v2898_v18 = vld [vmem:[%s3205_s3 + $0x6c] ss:$16 sps:$4 sm:$0xff]  }
 0x410   :  { %v959_v27 = vadd.f32 %v958_v23, %v919_v20  ;;  %v960_v28 = vpop.f32.mrb[30].mxu0  ;;  %v1001_v29 = vpop.f32.mrb[30].mxu1  ;;  %v1000_v40 = vadd.f32 %v999_v26, %v921_v43  ;;  %v2904_v19 = vld [vmem:[%s3205_s3 + $0x60] ss:$16 sps:$4 sm:$0xff]   ;;  %v2910_v20 = vld [vmem:[%s3205_s3 + $0x68] ss:$16 sps:$4 sm:$0xff]  }
 0x411   :  { %v1004_v30 = vadd.f32 %v957_v21, %v2632_v42  ;;  %v961_v31 = vpop.f32.mrb[31].mxu0  ;;  %v1002_v32 = vpop.f32.mrb[31].mxu1  ;;  %v1006_v47 = vadd.f32 %v998_v41, %v2638_v63  ;;  %v2916_v21 = vld [vmem:[%s3205_s3 + $0x84] ss:$16 sps:$4 sm:$0xff]   ;;  %v2928_v23 = vld [vmem:[%s3205_s3 + $0x80] ss:$16 sps:$4 sm:$0xff]  }
 0x412   :  { %v1005_v33 = vadd.f32 %v959_v27, %v2634_v46  ;;  %v1007_v2 = vadd.f32 %v1000_v40, %v2641_v34  ;;  %v2940_v26 = vld [vmem:[%s3205_s3 + $0xa4] ss:$16 sps:$4 sm:$0xff]   ;;  %v2946_v27 = vld [vmem:[%s3205_s3 + $0xac] ss:$16 sps:$4 sm:$0xff]   ;;  %v2952_v28 = vld [vmem:[%s3205_s3 + $0xa0] ss:$16 sps:$4 sm:$0xff]  }
 0x413   :  { %v1939_v37 = vmul.f32 -1.442695, %v1004_v30  ;;  %v1941_v3 = vmul.f32 -1.442695, %v1006_v47  ;;  %v2958_v29 = vld [vmem:[%s3205_s3 + $0xa8] ss:$16 sps:$4 sm:$0xff]  }
 0x414   :  { %v1940_v39 = vmul.f32 -1.442695, %v1005_v33  ;;  %v2964_v30 = vld [vmem:[%s3205_s3 + $0xc4] ss:$16 sps:$4 sm:$0xff]   ;;  %v2970_v31 = vld [vmem:[%s3205_s3 + $0xcc] ss:$16 sps:$4 sm:$0xff]  }
 0x415   :  { %2169 = vpow2.f32 %v1939_v37  ;;  %v2976_v32 = vld [vmem:[%s3205_s3 + $0xc0] ss:$16 sps:$4 sm:$0xff]   ;;  %v2982_v33 = vld [vmem:[%s3205_s3 + $0xc8] ss:$16 sps:$4 sm:$0xff]   ;;  %v2994_v37 = vld [vmem:[%s3205_s3 + $0xec] ss:$16 sps:$4 sm:$0xff]  }
 0x416   :  { %2171 = vpow2.f32 %v1940_v39  ;;  %v3000_v38 = vld [vmem:[%s3205_s3 + $0xe0] ss:$16 sps:$4 sm:$0xff]   ;;  %v3006_v39 = vld [vmem:[%s3205_s3 + $0xe8] ss:$16 sps:$4 sm:$0xff]  }
 0x417   :  { %2173 = vtanh.f32 %v1007_v2  ;;  %v1049_v41 = vld [vmem:[#allocation2 + $0x40] ss:$16 sps:$4 sm:$0xff]   ;;  %v1050_v43 = vld [vmem:[#allocation2 + $0x48] ss:$16 sps:$4 sm:$0xff]  }
 0x418   :  { %2175 = vpow2.f32 %v1941_v3  ;;  %v1053_v40 = vunpack.c.l.bf16 %v1049_v41  ;;  %v1054_v3 = vunpack.c.l.bf16 %v1050_v43  ;;  %v1055_v36 = vunpack.c.h.bf16 %v1049_v41 }
 0x41f   :  { %v2170_v4 = vpop.eup %2169 }
 0x420   :  { %v1017_v5 = vadd.f32 1.0, %v2170_v4  ;;  %v2172_v25 = vpop.eup %2171 }
 0x421   :  { %v1018_v44 = vadd.f32 1.0, %v2172_v25  ;;  %v2174_v45 = vpop.eup %2173 }
 0x422   :  { %2177 = vrcp.f32 %v1017_v5  ;;  %v2176_v48 = vpop.eup %2175 }
 0x423   :  { %2179 = vrcp.f32 %v1018_v44  ;;  %v1019_v8 = vadd.f32 1.0, %v2176_v48 }
 0x425   :  { %2181 = vrcp.f32 %v1019_v8 }
 0x42c   :  { %v2178_v14 = vpop.eup %2177 }
 0x42d   :  { %v1028_v54 = vmul.f32 %v2178_v14, %v2174_v45  ;;  %v2180_v49 = vpop.eup %2179 }
 0x42e   :  { %v1027_v55 = vmul.f32 %v2180_v49, %v2763_v56 }
 0x42f   :  { %v2182_v53 = vpop.eup %2181 }
 0x430   :  { %v1029_v50 = vadd.f32 %v1028_v54, %v1027_v55 }
 0x432   :  { %2183 = vtanh.f32 %v1029_v50  ;;  %v2825_v59 = vsel %vm1039_vm15, %v1029_v50, %v2763_v56  ;;  %v2836_v56 = vld [vmem:[%s3205_s3 + $0x8] ss:$16 sps:$4 sm:$0xff]  }
 0x43c   :  { %v2184_v52 = vpop.eup %2183 }
 0x43d   :  { %v1031_v57 = vmul.f32 %v2184_v52, %v2182_v53  ;;  %v1056_v52 = vunpack.c.h.bf16 %v1050_v43 }
 0x43f   :  { %v2828_v58 = vsel %vm1039_vm15, %v1031_v57, %v2766_v0  ;;  %v2842_v0 = vld [vmem:[%s3205_s3 + $0x24] ss:$16 sps:$4 sm:$0xff]  }
 0x440   :  { %v1042_v61 = vpack.c.bf16 %v2828_v58, %v2828_v58 }
 0x442   :  { %v1044_v62 = vsel %vm1043_vm0, %v1042_v61, 0  ;;  %1090 = vmatmul.mubr.bf16.vlgmr.msra.gmra.mrb[32].mxu0 %v1042_v61  ;;  %1131 = vmatmul.mubr.bf16.vlgmr.msra.gmra.mrb[32].mxu1 %v1042_v61 }
 0x443   :  { %v1046_v51 = vrot.slane %v1044_v62, 4  ;;  %1202 = vmatpush1.bf16.msra.mxu0 %v2773_v7  ;;  %1243 = vmatpush1.bf16.msra.mxu1 %v2836_v56 }
 0x444   :  { %1203 = vmatprep.subr.bf16.mxu0 %v2842_v0  ;;  %1244 = vmatprep.subr.bf16.mxu1 %v2848_v6 }
 0x445   :  { %1048 = vst [vmem:[#allocation3 + $0x8] sm:$0xf0] %v1046_v51  ;;  %1233 = vmatprep.mubr.bf16.mxu0 %v2281_v1  ;;  %1274 = vmatprep.mubr.bf16.mxu1 %v2281_v1 }
 0x447   :  { %1204 = vmatpush1.bf16.msra.mxu0 %v2856_v60  ;;  %1245 = vmatpush1.bf16.msra.mxu1 %v2862_v11 }
 0x448   :  { %1205 = vmatprep.subr.bf16.mxu0 %v2868_v12  ;;  %1246 = vmatprep.subr.bf16.mxu1 %v2874_v13 }
 0x44b   :  { %1206 = vmatpush1.bf16.msra.mxu0 %v2880_v15  ;;  %1247 = vmatpush1.bf16.msra.mxu1 %v2886_v16 }
 0x44c   :  { %1207 = vmatprep.subr.bf16.mxu0 %v2892_v17  ;;  %1248 = vmatprep.subr.bf16.mxu1 %v2898_v18 }
 0x44f   :  { %1208 = vmatpush1.bf16.msra.mxu0 %v2904_v19  ;;  %1249 = vmatpush1.bf16.msra.mxu1 %v2910_v20 }
 0x450   :  { %1209 = vmatprep.subr.bf16.mxu0 %v2916_v21  ;;  %1250 = vmatprep.subr.bf16.mxu1 %v2922_v22 }
 0x453   :  { %1210 = vmatpush1.bf16.msra.mxu0 %v2928_v23  ;;  %1251 = vmatpush1.bf16.msra.mxu1 %v2934_v24 }
 0x454   :  { %1211 = vmatprep.subr.bf16.mxu0 %v2940_v26  ;;  %1252 = vmatprep.subr.bf16.mxu1 %v2946_v27 }
 0x457   :  { %1212 = vmatpush1.bf16.msra.mxu0 %v2952_v28  ;;  %1253 = vmatpush1.bf16.msra.mxu1 %v2958_v29 }
 0x458   :  { %1213 = vmatprep.subr.bf16.mxu0 %v2964_v30  ;;  %1254 = vmatprep.subr.bf16.mxu1 %v2970_v31 }
 0x45b   :  { %1214 = vmatpush1.bf16.msra.mxu0 %v2976_v32  ;;  %1255 = vmatpush1.bf16.msra.mxu1 %v2982_v33 }
 0x45c   :  { %1215 = vmatprep.subr.bf16.mxu0 %v2988_v35  ;;  %1256 = vmatprep.subr.bf16.mxu1 %v2994_v37 }
 0x45f   :  { %1216 = vmatpush1.bf16.msra.mxu0 %v3000_v38  ;;  %1257 = vmatpush1.bf16.msra.mxu1 %v3006_v39 }
 0x460   :  { %1336 = vmatprep.subr.bf16.mxu0 %v2810_v9  ;;  %1377 = vmatprep.subr.bf16.mxu1 %v2816_v10 }
 0x515   :  { %v1091_v47 = vpop.f32.mrb[32].mxu0  ;;  %v1132_v2 = vpop.f32.mrb[32].mxu1 }
 0x516   :  { %v1092_v4 = vadd.f32 %v1091_v47, %v1053_v40  ;;  %v1093_v5 = vpop.f32.mrb[33].mxu0  ;;  %v1134_v25 = vpop.f32.mrb[33].mxu1  ;;  %v1133_v53 = vadd.f32 %v1132_v2, %v1055_v36 }
 0x517   :  { %v1094_v44 = vadd.f32 %v1093_v5, %v1054_v3  ;;  %v1095_v45 = vpop.f32.mrb[34].mxu0  ;;  %v1136_v48 = vpop.f32.mrb[34].mxu1  ;;  %v1135_v57 = vadd.f32 %v1134_v25, %v1056_v52 }
 0x518   :  { %v1139_v14 = vadd.f32 %v1092_v4, %v2632_v42  ;;  %v1096_v54 = vpop.f32.mrb[35].mxu0  ;;  %v1137_v49 = vpop.f32.mrb[35].mxu1  ;;  %v1141_v61 = vadd.f32 %v1133_v53, %v2638_v63 }
 0x519   :  { %v1140_v8 = vadd.f32 %v1094_v44, %v2634_v46  ;;  %v1142_v62 = vadd.f32 %v1135_v57, %v2641_v34  ;;  %v1173_v48 = vpop.permute.xlu0 %1172 }
 0x51a   :  { %v1943_v55 = vmul.f32 -1.442695, %v1139_v14  ;;  %v1945_v51 = vmul.f32 -1.442695, %v1141_v61  ;;  %vm1174_vm1 = vcmp.eq.s32.totalorder %v1173_v48, 1 }
 0x51b   :  { %v1944_v50 = vmul.f32 -1.442695, %v1140_v8  ;;  %vm1178_vm2 = vmpackc.low %vm1174_vm1, %vm1174_vm1  ;;  %v1183_v61 = vld [vmem:[#allocation2 + $0x50] sm:$0xf0] }
 0x51c   :  { %2185 = vpow2.f32 %v1943_v55 }
 0x51d   :  { %2187 = vpow2.f32 %v1944_v50 }
 0x51e   :  { %2189 = vtanh.f32 %v1142_v62 }
 0x51f   :  { %2191 = vpow2.f32 %v1945_v51 }
 0x526   :  { %v2186_v40 = vpop.eup %2185 }
 0x527   :  { %v1152_v47 = vadd.f32 1.0, %v2186_v40  ;;  %v2188_v3 = vpop.eup %2187 }
 0x528   :  { %v1153_v4 = vadd.f32 1.0, %v2188_v3  ;;  %v2190_v41 = vpop.eup %2189 }
 0x529   :  { %2193 = vrcp.f32 %v1152_v47  ;;  %v2192_v5 = vpop.eup %2191 }
 0x52a   :  { %2195 = vrcp.f32 %v1153_v4  ;;  %v1154_v45 = vadd.f32 1.0, %v2192_v5  ;;  %v1191_v4 = vrot.slane %v1183_v61, 4  ;;  %v1184_v5 = vld [vmem:[#allocation2 + $0x58] sm:$0xf0] }
 0x52c   :  { %2197 = vrcp.f32 %v1154_v45 }
 0x533   :  { %v2194_v44 = vpop.eup %2193 }
 0x534   :  { %v1163_v2 = vmul.f32 %v2194_v44, %v2190_v41  ;;  %v2196_v43 = vpop.eup %2195 }
 0x535   :  { %v1162_v25 = vmul.f32 %v2196_v43, %v2825_v59 }
 0x536   :  { %v2198_v49 = vpop.eup %2197 }
 0x537   :  { %v1164_v14 = vadd.f32 %v1163_v2, %v1162_v25 }
 0x539   :  { %2199 = vtanh.f32 %v1164_v14  ;;  %v3017_v54 = vsel %vm1174_vm1, %v1164_v14, %v2825_v59  ;;  %v1181_v59 = vld [vmem:[#allocation2 + $0x40] sm:$0xf0]  ;;  %v1192_v14 = vrot.slane %v1184_v5, 4 }
 0x53a   :  { %v1189_v52 = vrot.slane %v1181_v59, 4 }
 0x53c   :  { %v1197_v62 = vunpack.c.l.bf16 %v1189_v52 }
 0x543   :  { %v2200_v8 = vpop.eup %2199 }
 0x544   :  { %v1166_v55 = vmul.f32 %v2200_v8, %v2198_v49  ;;  %v1199_v8 = vunpack.c.l.bf16 %v1191_v4 }
 0x546   :  { %v3020_v36 = vsel %vm1174_vm1, %v1166_v55, %v2828_v58  ;;  %v1182_v58 = vld [vmem:[#allocation2 + $0x48] sm:$0xf0] }
 0x547   :  { %v1177_v50 = vpack.c.bf16 %v3020_v36, %v3020_v36  ;;  %v1190_v57 = vrot.slane %v1182_v58, 4 }
 0x549   :  { %v1179_v53 = vsel %vm1178_vm2, %v1177_v50, 0  ;;  %1234 = vmatmul.mubr.bf16.vlgmr.msra.gmra.mrb[36].mxu0 %v1177_v50  ;;  %1275 = vmatmul.mubr.bf16.vlgmr.msra.gmra.mrb[36].mxu1 %v1177_v50  ;;  %v1198_v47 = vunpack.c.l.bf16 %v1190_v57 }
 0x54a   :  { %1180 = vst [vmem:[#allocation3 + $0x10] sm:$0xf] %v1179_v53  ;;  %1337 = vmatpush1.bf16.msra.mxu0 %v2773_v7  ;;  %1378 = vmatpush1.bf16.msra.mxu1 %v2836_v56  ;;  %v1200_v53 = vunpack.c.l.bf16 %v1192_v14 }
 0x54b   :  { %1338 = vmatprep.subr.bf16.mxu0 %v2842_v0  ;;  %1379 = vmatprep.subr.bf16.mxu1 %v2848_v6 }
 0x54c   :  { %1368 = vmatprep.mubr.bf16.mxu0 %v2281_v1  ;;  %1409 = vmatprep.mubr.bf16.mxu1 %v2281_v1 }
 0x54e   :  { %1339 = vmatpush1.bf16.msra.mxu0 %v2856_v60  ;;  %1380 = vmatpush1.bf16.msra.mxu1 %v2862_v11 }
 0x54f   :  { %1340 = vmatprep.subr.bf16.mxu0 %v2868_v12  ;;  %1381 = vmatprep.subr.bf16.mxu1 %v2874_v13 }
 0x552   :  { %1341 = vmatpush1.bf16.msra.mxu0 %v2880_v15  ;;  %1382 = vmatpush1.bf16.msra.mxu1 %v2886_v16 }
 0x553   :  { %1342 = vmatprep.subr.bf16.mxu0 %v2892_v17  ;;  %1383 = vmatprep.subr.bf16.mxu1 %v2898_v18 }
 0x556   :  { %1343 = vmatpush1.bf16.msra.mxu0 %v2904_v19  ;;  %1384 = vmatpush1.bf16.msra.mxu1 %v2910_v20 }
 0x557   :  { %1344 = vmatprep.subr.bf16.mxu0 %v2916_v21  ;;  %1385 = vmatprep.subr.bf16.mxu1 %v2922_v22 }
 0x55a   :  { %1345 = vmatpush1.bf16.msra.mxu0 %v2928_v23  ;;  %1386 = vmatpush1.bf16.msra.mxu1 %v2934_v24 }
 0x55b   :  { %1346 = vmatprep.subr.bf16.mxu0 %v2940_v26  ;;  %1387 = vmatprep.subr.bf16.mxu1 %v2946_v27 }
 0x55e   :  { %1347 = vmatpush1.bf16.msra.mxu0 %v2952_v28  ;;  %1388 = vmatpush1.bf16.msra.mxu1 %v2958_v29 }
 0x55f   :  { %1348 = vmatprep.subr.bf16.mxu0 %v2964_v30  ;;  %1389 = vmatprep.subr.bf16.mxu1 %v2970_v31 }
 0x562   :  { %1349 = vmatpush1.bf16.msra.mxu0 %v2976_v32  ;;  %1390 = vmatpush1.bf16.msra.mxu1 %v2982_v33 }
 0x563   :  { %1350 = vmatprep.subr.bf16.mxu0 %v2988_v35  ;;  %1391 = vmatprep.subr.bf16.mxu1 %v2994_v37 }
 0x566   :  { %1351 = vmatpush1.bf16.msra.mxu0 %v3000_v38  ;;  %1392 = vmatpush1.bf16.msra.mxu1 %v3006_v39 }
 0x567   :  { %1480 = vmatprep.subr.bf16.mxu0 %v2810_v9  ;;  %1521 = vmatprep.subr.bf16.mxu1 %v2816_v10 }
 0x61c   :  { %v1235_v51 = vpop.f32.mrb[36].mxu0  ;;  %v1276_v40 = vpop.f32.mrb[36].mxu1 }
 0x61d   :  { %v1236_v3 = vadd.f32 %v1235_v51, %v1197_v62  ;;  %v1237_v41 = vpop.f32.mrb[37].mxu0  ;;  %v1278_v44 = vpop.f32.mrb[37].mxu1  ;;  %v1277_v50 = vadd.f32 %v1276_v40, %v1199_v8 }
 0x61e   :  { %v1238_v2 = vadd.f32 %v1237_v41, %v1198_v47  ;;  %v1239_v43 = vpop.f32.mrb[38].mxu0  ;;  %v1280_v45 = vpop.f32.mrb[38].mxu1  ;;  %v1279_v59 = vadd.f32 %v1278_v44, %v1200_v53 }
 0x61f   :  { %v1283_v9 = vadd.f32 %v1236_v3, %v2632_v42  ;;  %v1240_v10 = vpop.f32.mrb[39].mxu0  ;;  %v1281_v25 = vpop.f32.mrb[39].mxu1  ;;  %v1285_v58 = vadd.f32 %v1277_v50, %v2638_v63 }
 0x620   :  { %v1284_v48 = vadd.f32 %v1238_v2, %v2634_v46  ;;  %v1286_v52 = vadd.f32 %v1279_v59, %v2641_v34  ;;  %v1317_v43 = vpop.permute.xlu1 %1316 }
 0x621   :  { %v1947_v49 = vmul.f32 -1.442695, %v1283_v9  ;;  %v1949_v57 = vmul.f32 -1.442695, %v1285_v58  ;;  %vm1318_vm3 = vcmp.eq.s32.totalorder %v1317_v43, 1  ;;  %v1452_v58 = vpop.permute.xlu0 %1451  ;;  %v2109_v43 = vld [vmem:[%s3208_s5 + $0x20] sm:$0xff]  }
 0x622   :  { %v1948_v55 = vmul.f32 -1.442695, %v1284_v48  ;;  %vm1322_vm4 = vmpackc.low %vm1318_vm3, %vm1318_vm3  ;;  %vm1453_vm5 = vcmp.eq.s32.totalorder %v1452_v58, 1 }
 0x623   :  { %2201 = vpow2.f32 %v1947_v49  ;;  %vm1457_vm6 = vmpackc.low %vm1453_vm5, %vm1453_vm5 }
 0x624   :  { %2203 = vpow2.f32 %v1948_v55 }
 0x625   :  { %2205 = vtanh.f32 %v1286_v52 }
 0x626   :  { %2207 = vpow2.f32 %v1949_v57 }
 0x62d   :  { %v2202_v61 = vpop.eup %2201 }
 0x62e   :  { %v1296_v62 = vadd.f32 1.0, %v2202_v61  ;;  %v2204_v51 = vpop.eup %2203 }
 0x62f   :  { %v1297_v47 = vadd.f32 1.0, %v2204_v51  ;;  %v2206_v3 = vpop.eup %2205 }
 0x630   :  { %2209 = vrcp.f32 %v1296_v62  ;;  %v2208_v4 = vpop.eup %2207 }
 0x631   :  { %2211 = vrcp.f32 %v1297_v47  ;;  %v1298_v2 = vadd.f32 1.0, %v2208_v4 }
 0x633   :  { %2213 = vrcp.f32 %v1298_v2  ;;  %v2107_v2 = vld [vmem:[%s3208_s5 + $0x10] sm:$0xff]  }
 0x63a   :  { %v2210_v41 = vpop.eup %2209 }
 0x63b   :  { %v1307_v40 = vmul.f32 %v2210_v41, %v2206_v3  ;;  %v2212_v5 = vpop.eup %2211  ;;  %v2106_v41 = vld [vmem:[%s3208_s5 + $0x8] sm:$0xff]  }
 0x63c   :  { %v1306_v44 = vmul.f32 %v2212_v5, %v3017_v54  ;;  %v1606_v5 = vld [vmem:[#allocation3] sm:$0xff] }
 0x63d   :  { %v2214_v10 = vpop.eup %2213 }
 0x63e   :  { %v1308_v45 = vadd.f32 %v1307_v40, %v1306_v44  ;;  %v2108_v44 = vld [vmem:[%s3208_s5 + $0x18] sm:$0xff]  }
 0x640   :  { %2215 = vtanh.f32 %v1308_v45  ;;  %v3064_v9 = vsel %vm1318_vm3, %v1308_v45, %v3017_v54  ;;  %v2110_v45 = vld [vmem:[%s3208_s5 + $0x28] sm:$0xff]  }
 0x64a   :  { %v2216_v25 = vpop.eup %2215 }
 0x64b   :  { %v1310_v48 = vmul.f32 %v2216_v25, %v2214_v10  ;;  %v2112_v10 = vld [vmem:[%s3208_s5 + $0x38] sm:$0xff]   ;;  %v1607_v25 = vld [vmem:[#allocation3 + $0x8] sm:$0xff] }
 0x64d   :  { %v3067_v14 = vsel %vm1318_vm3, %v1310_v48, %v3020_v36 }
 0x64e   :  { %v1321_v49 = vpack.c.bf16 %v3067_v14, %v3067_v14 }
 0x650   :  { %v1323_v8 = vsel %vm1322_vm4, %v1321_v49, 0  ;;  %1369 = vmatmul.mubr.bf16.vlgmr.msra.gmra.mrb[40].mxu0 %v1321_v49  ;;  %1410 = vmatmul.mubr.bf16.vlgmr.msra.gmra.mrb[40].mxu1 %v1321_v49  ;;  %v2282_v49 = vmov 0.0  }
 0x651   :  { %v1325_v55 = vrot.slane %v1323_v8, 4  ;;  %1481 = vmatpush1.bf16.msra.mxu0 %v2773_v7  ;;  %1522 = vmatpush1.bf16.msra.mxu1 %v2836_v56  ;;  %v1328_v7 = vld [vmem:[#allocation2 + $0x60] ss:$16 sps:$4 sm:$0xff]   ;;  %v1329_v56 = vld [vmem:[#allocation2 + $0x68] ss:$16 sps:$4 sm:$0xff]  }
 0x652   :  { %1482 = vmatprep.subr.bf16.mxu0 %v2842_v0  ;;  %1523 = vmatprep.subr.bf16.mxu1 %v2848_v6  ;;  %v1332_v0 = vunpack.c.l.bf16 %v1328_v7  ;;  %v2114_v8 = vld [vmem:[%s3209_s7 + $0x8] sm:$0xff]  }
 0x653   :  { %1327 = vst [vmem:[#allocation3 + $0x10] sm:$0xf0] %v1325_v55  ;;  %1512 = vmatprep.mubr.bf16.mxu0 %v2281_v1  ;;  %1553 = vmatprep.mubr.bf16.mxu1 %v2281_v1  ;;  %v2105_v1 = vld [vmem:[%s3208_s5] sm:$0xff]   ;;  %v2115_v55 = vld [vmem:[%s3209_s7 + $0x10] sm:$0xff]  }
 0x655   :  { %1483 = vmatpush1.bf16.msra.mxu0 %v2856_v60  ;;  %1524 = vmatpush1.bf16.msra.mxu1 %v2862_v11  ;;  %v1333_v11 = vunpack.c.l.bf16 %v1329_v56 }
 0x656   :  { %1484 = vmatprep.subr.bf16.mxu0 %v2868_v12  ;;  %1525 = vmatprep.subr.bf16.mxu1 %v2874_v13 }
 0x659   :  { %1485 = vmatpush1.bf16.msra.mxu0 %v2880_v15  ;;  %1526 = vmatpush1.bf16.msra.mxu1 %v2886_v16 }
 0x65a   :  { %1486 = vmatprep.subr.bf16.mxu0 %v2892_v17  ;;  %1527 = vmatprep.subr.bf16.mxu1 %v2898_v18  ;;  %v1608_v48 = vld [vmem:[#allocation3 + $0x10] sm:$0xff] }
 0x65d   :  { %1487 = vmatpush1.bf16.msra.mxu0 %v2904_v19  ;;  %1528 = vmatpush1.bf16.msra.mxu1 %v2910_v20 }
 0x65e   :  { %1488 = vmatprep.subr.bf16.mxu0 %v2916_v21  ;;  %1529 = vmatprep.subr.bf16.mxu1 %v2922_v22 }
 0x661   :  { %1489 = vmatpush1.bf16.msra.mxu0 %v2928_v23  ;;  %1530 = vmatpush1.bf16.msra.mxu1 %v2934_v24  ;;  %v1334_v24 = vunpack.c.h.bf16 %v1328_v7  ;;  %v2117_v7 = vld [vmem:[%s3209_s7 + $0x20] sm:$0xff]  }
 0x662   :  { %1490 = vmatprep.subr.bf16.mxu0 %v2940_v26  ;;  %1531 = vmatprep.subr.bf16.mxu1 %v2946_v27 }
 0x665   :  { %1491 = vmatpush1.bf16.msra.mxu0 %v2952_v28  ;;  %1532 = vmatpush1.bf16.msra.mxu1 %v2958_v29  ;;  %v1335_v28 = vunpack.c.h.bf16 %v1329_v56  ;;  %v2118_v56 = vld [vmem:[%s3209_s7 + $0x28] sm:$0xff]  }
 0x666   :  { %1492 = vmatprep.subr.bf16.mxu0 %v2964_v30  ;;  %1533 = vmatprep.subr.bf16.mxu1 %v2970_v31 }
 0x669   :  { %1493 = vmatpush1.bf16.msra.mxu0 %v2976_v32  ;;  %1534 = vmatpush1.bf16.msra.mxu1 %v2982_v33 }
 0x66a   :  { %1494 = vmatprep.subr.bf16.mxu0 %v2988_v35  ;;  %1535 = vmatprep.subr.bf16.mxu1 %v2994_v37 }
 0x66d   :  { %1495 = vmatpush1.bf16.msra.mxu0 %v3000_v38  ;;  %1536 = vmatpush1.bf16.msra.mxu1 %v3006_v39 }
 0x66e   :  { %1998 = vmatprep.subr.bf16.mxu0 %v2105_v1  ;;  %2022 = vmatprep.subr.bf16.mxu1 %v2282_v49 }
 0x723   :  { %v1370_v6 = vpop.f32.mrb[40].mxu0  ;;  %v1411_v60 = vpop.f32.mrb[40].mxu1 }
 0x724   :  { %v1371_v12 = vadd.f32 %v1370_v6, %v1332_v0  ;;  %v1372_v13 = vpop.f32.mrb[41].mxu0  ;;  %v1413_v15 = vpop.f32.mrb[41].mxu1  ;;  %v1412_v27 = vadd.f32 %v1411_v60, %v1334_v24  ;;  %v2119_v0 = vld [vmem:[%s3209_s7 + $0x30] sm:$0xff]   ;;  %v2120_v6 = vld [vmem:[%s3209_s7 + $0x38] sm:$0xff]   ;;  %v1460_v60 = vld [vmem:[#allocation2 + $0x60] sm:$0xf0] }
 0x725   :  { %v1373_v16 = vadd.f32 %v1372_v13, %v1333_v11  ;;  %v1374_v17 = vpop.f32.mrb[42].mxu0  ;;  %v1415_v18 = vpop.f32.mrb[42].mxu1  ;;  %v1414_v29 = vadd.f32 %v1413_v15, %v1335_v28  ;;  %v1461_v11 = vld [vmem:[#allocation2 + $0x68] sm:$0xf0]  ;;  %v1462_v15 = vld [vmem:[#allocation2 + $0x70] sm:$0xf0] }
 0x726   :  { %v1418_v19 = vadd.f32 %v1371_v12, %v2632_v42  ;;  %v1375_v20 = vpop.f32.mrb[43].mxu0  ;;  %v1416_v21 = vpop.f32.mrb[43].mxu1  ;;  %v1420_v30 = vadd.f32 %v1412_v27, %v2638_v63  ;;  %v1468_v12 = vrot.slane %v1460_v60, 4  ;;  %v1469_v13 = vrot.slane %v1461_v11, 4 }
 0x727   :  { %v1419_v22 = vadd.f32 %v1373_v16, %v2634_v46  ;;  %v1421_v31 = vadd.f32 %v1414_v29, %v2641_v34  ;;  %v1470_v21 = vrot.slane %v1462_v15, 4 }
 0x728   :  { %v1951_v23 = vmul.f32 -1.442695, %v1418_v19  ;;  %v1953_v32 = vmul.f32 -1.442695, %v1420_v30  ;;  %v1476_v16 = vunpack.c.l.bf16 %v1468_v12  ;;  %v1477_v19 = vunpack.c.l.bf16 %v1469_v13 }
 0x729   :  { %v1952_v26 = vmul.f32 -1.442695, %v1419_v22 }
 0x72a   :  { %2217 = vpow2.f32 %v1951_v23  ;;  %v1463_v23 = vld [vmem:[#allocation2 + $0x78] sm:$0xf0] }
 0x72b   :  { %2219 = vpow2.f32 %v1952_v26 }
 0x72c   :  { %2221 = vtanh.f32 %v1421_v31 }
 0x72d   :  { %2223 = vpow2.f32 %v1953_v32 }
 0x734   :  { %v2218_v33 = vpop.eup %2217 }
 0x735   :  { %v1431_v35 = vadd.f32 1.0, %v2218_v33  ;;  %v2220_v37 = vpop.eup %2219  ;;  %v1471_v33 = vrot.slane %v1463_v23, 4 }
 0x736   :  { %v1432_v38 = vadd.f32 1.0, %v2220_v37  ;;  %v2222_v39 = vpop.eup %2221  ;;  %v1478_v37 = vunpack.c.l.bf16 %v1470_v21 }
 0x737   :  { %2225 = vrcp.f32 %v1431_v35  ;;  %v2224_v54 = vpop.eup %2223 }
 0x738   :  { %2227 = vrcp.f32 %v1432_v38  ;;  %v1433_v59 = vadd.f32 1.0, %v2224_v54  ;;  %v1479_v54 = vunpack.c.l.bf16 %v1471_v33 }
 0x73a   :  { %2229 = vrcp.f32 %v1433_v59 }
 0x741   :  { %v2226_v36 = vpop.eup %2225 }
 0x742   :  { %v1442_v50 = vmul.f32 %v2226_v36, %v2222_v39  ;;  %v2228_v53 = vpop.eup %2227 }
 0x743   :  { %v1441_v52 = vmul.f32 %v2228_v53, %v3064_v9 }
 0x744   :  { %v2230_v62 = vpop.eup %2229 }
 0x745   :  { %v1443_v57 = vadd.f32 %v1442_v50, %v1441_v52 }
 0x747   :  { %2231 = vtanh.f32 %v1443_v57  ;;  %v3112_v61 = vsel %vm1453_vm5, %v1443_v57, %v3064_v9  ;;  %v2111_v9 = vld [vmem:[%s3208_s5 + $0x30] sm:$0xff]  }
 0x751   :  { %v2232_v51 = vpop.eup %2231 }
 0x752   :  { %v1445_v47 = vmul.f32 %v2232_v51, %v2230_v62 }
 0x754   :  { %v3115_v3 = vsel %vm1453_vm5, %v1445_v47, %v3067_v14  ;;  %v2113_v14 = vld [vmem:[%s3209_s7] sm:$0xff]  }
 0x755   :  { %v1456_v4 = vpack.c.bf16 %v3115_v3, %v3115_v3  ;;  %v1959_v47 = vld [vmem:[%s3210_s6] ss:$0 sm:$0xff] }
 0x757   :  { %v1458_v40 = vsel %vm1457_vm6, %v1456_v4, 0  ;;  %1513 = vmatmul.mubr.bf16.vlgmr.msra.gmra.mrb[44].mxu0 %v1456_v4  ;;  %1554 = vmatmul.mubr.bf16.vlgmr.msra.gmra.mrb[44].mxu1 %v1456_v4 }
 0x758   :  { %1459 = vst [vmem:[#allocation3 + $0x18] sm:$0xf] %v1458_v40  ;;  %1999 = vmatpush3.bf16.msra.mxu0 %v2105_v1  ;;  %2014 = vmatprep.mubr.bf16.mxu0 %v1606_v5  ;;  %v2116_v1 = vld [vmem:[%s3209_s7 + $0x18] sm:$0xff]  }
 0x759   :  { %2000 = vmatprep.subr.bf16.mxu0 %v2106_v41  ;;  %2023 = vmatpush3.bf16.msra.mxu1 %v2113_v14 }
 0x75a   :  { %2024 = vmatprep.subr.bf16.mxu1 %v2282_v49  ;;  %2038 = vmatprep.mubr.msk.bf16.mxu1 %vm2283_vm7, %v2282_v49 }
 0x75c   :  { %2001 = vmatpush3.bf16.msra.mxu0 %v2106_v41 }
 0x75d   :  { %2002 = vmatprep.subr.bf16.mxu0 %v2107_v2  ;;  %2025 = vmatpush3.bf16.msra.mxu1 %v2114_v8 }
 0x75e   :  { %2026 = vmatprep.subr.bf16.mxu1 %v2282_v49 }
 0x760   :  { %2003 = vmatpush3.bf16.msra.mxu0 %v2107_v2 }
 0x761   :  { %2004 = vmatprep.subr.bf16.mxu0 %v2108_v44  ;;  %2027 = vmatpush3.bf16.msra.mxu1 %v2115_v55 }
 0x762   :  { %2028 = vmatprep.subr.bf16.mxu1 %v2282_v49 }
 0x764   :  { %2005 = vmatpush3.bf16.msra.mxu0 %v2108_v44 }
 0x765   :  { %2006 = vmatprep.subr.bf16.mxu0 %v2109_v43  ;;  %2029 = vmatpush3.bf16.msra.mxu1 %v2116_v1 }
 0x766   :  { %2030 = vmatprep.subr.bf16.mxu1 %v2282_v49 }
 0x768   :  { %2007 = vmatpush3.bf16.msra.mxu0 %v2109_v43 }
 0x769   :  { %2008 = vmatprep.subr.bf16.mxu0 %v2110_v45  ;;  %2031 = vmatpush3.bf16.msra.mxu1 %v2117_v7 }
 0x76a   :  { %2032 = vmatprep.subr.bf16.mxu1 %v2282_v49 }
 0x76c   :  { %2009 = vmatpush3.bf16.msra.mxu0 %v2110_v45 }
 0x76d   :  { %2010 = vmatprep.subr.bf16.mxu0 %v2111_v9  ;;  %2033 = vmatpush3.bf16.msra.mxu1 %v2118_v56 }
 0x76e   :  { %2034 = vmatprep.subr.bf16.mxu1 %v2282_v49 }
 0x770   :  { %2011 = vmatpush3.bf16.msra.mxu0 %v2111_v9 }
 0x771   :  { %2012 = vmatprep.subr.bf16.mxu0 %v2112_v10  ;;  %2035 = vmatpush3.bf16.msra.mxu1 %v2119_v0  ;;  %v1968_v0 = vld [vmem:[%s3212_s8] ss:$0 sm:$0xff] }
 0x772   :  { %2036 = vmatprep.subr.bf16.mxu1 %v2282_v49 }
 0x774   :  { %2013 = vmatpush3.bf16.msra.mxu0 %v2112_v10 }
 0x775   :  { %2037 = vmatpush3.bf16.msra.mxu1 %v2120_v6 }
 0x777   :  { %2015 = vmatmul.mubr.bf16.vlgmr.msra.gmra.mrb[48].mxu0 %v1607_v25 }
 0x778   :  { %2018 = vmatprep.mubr.bf16.mxu0 %v1608_v48  ;;  %v1596_v48 = vpop.permute.xlu1 %1595 }
 0x779   :  { %vm1597_vm8 = vcmp.eq.s32.totalorder %v1596_v48, 1 }
 0x77a   :  { %vm1600_vm9 = vmpackc.low %vm1597_vm8, %vm1597_vm8 }
 0x82a   :  { %v1514_v17 = vpop.f32.mrb[44].mxu0  ;;  %v1555_v18 = vpop.f32.mrb[44].mxu1 }
 0x82b   :  { %v1515_v20 = vadd.f32 %v1514_v17, %v1476_v16  ;;  %v1516_v22 = vpop.f32.mrb[45].mxu0  ;;  %v1557_v24 = vpop.f32.mrb[45].mxu1  ;;  %v1556_v39 = vadd.f32 %v1555_v18, %v1478_v37 }
 0x82c   :  { %v1517_v26 = vadd.f32 %v1516_v22, %v1477_v19  ;;  %v1518_v27 = vpop.f32.mrb[46].mxu0  ;;  %v1559_v28 = vpop.f32.mrb[46].mxu1  ;;  %v1558_v36 = vadd.f32 %v1557_v24, %v1479_v54 }
 0x82d   :  { %v1562_v29 = vadd.f32 %v1515_v20, %v2632_v42  ;;  %v1519_v30 = vpop.f32.mrb[47].mxu0  ;;  %v1560_v31 = vpop.f32.mrb[47].mxu1  ;;  %v1564_v50 = vadd.f32 %v1556_v39, %v2638_v63 }
 0x82e   :  { %v1563_v32 = vadd.f32 %v1517_v26, %v2634_v46  ;;  %v1565_v53 = vadd.f32 %v1558_v36, %v2641_v34 }
 0x82f   :  { %v1955_v35 = vmul.f32 -1.442695, %v1562_v29  ;;  %v1957_v59 = vmul.f32 -1.442695, %v1564_v50 }
 0x830   :  { %v1956_v38 = vmul.f32 -1.442695, %v1563_v32 }
 0x831   :  { %2233 = vpow2.f32 %v1955_v35 }
 0x832   :  { %2235 = vpow2.f32 %v1956_v38 }
 0x833   :  { %2237 = vtanh.f32 %v1565_v53 }
 0x834   :  { %2239 = vpow2.f32 %v1957_v59 }
 0x83b   :  { %v2234_v58 = vpop.eup %2233 }
 0x83c   :  { %v1575_v42 = vadd.f32 1.0, %v2234_v58  ;;  %v2236_v52 = vpop.eup %2235 }
 0x83d   :  { %v1576_v46 = vadd.f32 1.0, %v2236_v52  ;;  %v2238_v57 = vpop.eup %2237 }
 0x83e   :  { %2241 = vrcp.f32 %v1575_v42  ;;  %v2240_v62 = vpop.eup %2239 }
 0x83f   :  { %2243 = vrcp.f32 %v1576_v46  ;;  %v1577_v41 = vadd.f32 1.0, %v2240_v62 }
 0x841   :  { %2245 = vrcp.f32 %v1577_v41 }
 0x848   :  { %v2242_v51 = vpop.eup %2241 }
 0x849   :  { %v1586_v4 = vmul.f32 %v2242_v51, %v2238_v57  ;;  %v2244_v63 = vpop.eup %2243 }
 0x84a   :  { %v2016_v34 = vpop.f32.mrb[48].mxu0  ;;  %v1585_v40 = vmul.f32 %v2244_v63, %v3112_v61 }
 0x84b   :  { %v1724_v5 = vadd.f32 %v2016_v34, %v1959_v47  ;;  %v1715_v2 = vpop.f32.mrb[49].mxu0  ;;  %v2246_v61 = vpop.eup %2245 }
 0x84c   :  { %v1716_v44 = vadd.f32 %v1959_v47, %v1715_v2  ;;  %v2017_v43 = vpop.f32.mrb[50].mxu0  ;;  %v1587_v45 = vadd.f32 %v1586_v4, %v1585_v40 }
 0x84d   :  { %1748 = vst [vmem:[%s3211_s9 + $0x10] sm:$0xff] %v1724_v5  ;;  %v1727_v9 = vadd.f32 %v2017_v43, %v1959_v47  ;;  %v1718_v10 = vpop.f32.mrb[51].mxu0 }
 0x84e   :  { %1746 = vst [vmem:[%s3211_s9] sm:$0xff] %v1716_v44  ;;  %v1719_v25 = vadd.f32 %v1959_v47, %v1718_v10  ;;  %2247 = vtanh.f32 %v1587_v45 }
 0x84f   :  { %1749 = vst [vmem:[%s3211_s9 + $0x18] sm:$0xff] %v1727_v9 }
 0x850   :  { %1747 = vst [vmem:[%s3211_s9 + $0x8] sm:$0xff] %v1719_v25 }
 0x858   :  { %v2248_v14 = vpop.eup %2247 }
 0x859   :  { %v1589_v49 = vmul.f32 %v2248_v14, %v2246_v61 }
 0x85b   :  { %v1598_v8 = vsel %vm1597_vm8, %v1589_v49, %v3115_v3 }
 0x85c   :  { %v1599_v55 = vpack.c.bf16 %v1598_v8, %v1598_v8 }
 0x85e   :  { %v1601_v1 = vsel %vm1600_vm9, %v1599_v55, 0  ;;  %2039 = vmatmul.mubr.bf16.vlgmr.msra.gmra.mrb[48].mxu1 %v1599_v55 }
 0x85f   :  { %v1603_v7 = vrot.slane %v1601_v1, 4 }
 0x861   :  { %1605 = vst [vmem:[#allocation3 + $0x18] sm:$0xf0] %v1603_v7 }
 0x868   :  { %v1609_v56 = vld [vmem:[#allocation3 + $0x18] sm:$0xff] }
 0x869   :  { %2019 = vmatmul.mubr.bf16.gmra.mrb[52].mxu0 %v1609_v56 }
 0x931   :  { %v1859_v6 = vpop.f32.mrb[48].mxu1 }
 0x932   :  { %v1860_v60 = vadd.f32 %v1968_v0, %v1859_v6  ;;  %v2040_v11 = vpop.f32.mrb[49].mxu1 }
 0x933   :  { %v1862_v12 = vpop.f32.mrb[50].mxu1 }
 0x934   :  { %1865 = vst [vmem:[%s3213_s10] sm:$0xff] %v1860_v60  ;;  %v2041_v3 = vpop.f32.mrb[51].mxu1 }
 0x93c   :  { %v2020_v13 = vpop.f32.mrb[52].mxu0 }
 0x93d   :  { %v1740_v15 = vadd.f32 %v2020_v13, %v1959_v47  ;;  %v1731_v16 = vpop.f32.mrb[53].mxu0 }
 0x93e   :  { %v1732_v17 = vadd.f32 %v1959_v47, %v1731_v16  ;;  %v2021_v18 = vpop.f32.mrb[54].mxu0 }
 0x93f   :  { %1752 = vst [vmem:[%s3211_s9 + $0x30] sm:$0xff] %v1740_v15  ;;  %v1743_v19 = vadd.f32 %v2021_v18, %v1959_v47  ;;  %v1734_v20 = vpop.f32.mrb[55].mxu0 }
 0x940   :  { %1750 = vst [vmem:[%s3211_s9 + $0x20] sm:$0xff] %v1732_v17  ;;  %v1735_v21 = vadd.f32 %v1959_v47, %v1734_v20 }
 0x941   :  { %1753 = vst [vmem:[%s3211_s9 + $0x38] sm:$0xff] %v1743_v19 }
 0x942   :  { %1751 = vst [vmem:[%s3211_s9 + $0x28] sm:$0xff] %v1735_v21 }

</bundles_post_ra>
